<compile_context>
chip_gen: v5e
topology: v5e:2x2
jax: 0.10.0
libtpu: 0.0.40
codegen_flags: <defaults>
</compile_context>

<pallas_src>
import jax
import jax.numpy as jnp
from jax import lax
from jax.experimental import pallas as pl
from jax.experimental.pallas import tpu as pltpu

_LANES = 128
_CH = 16        # sublanes processed per inner-loop iteration (2 vregs tall)
_MAX_TS = 4096  # v7x guard: <= ~28 MiB double-buffered under 32 MiB scoped VMEM


def _round_up(n, m):
    return ((n + m - 1) // m) * m


def _mlp_kernel(w1_ref, b1_ref, w2_ref, b2_ref, w3_ref, b3_ref, x_ref, o_ref):
    """x_ref: (4, TS, 128) VMEM block, o_ref: (3, TS, 128) VMEM block.

    Weights (out, in) and biases live in SMEM.  All scalar reads happen once
    in the prologue; every layer is unrolled scalar*vector multiply-adds on
    the VPU over (16, 128) chunks.
    """
    ts = x_ref.shape[1]
    n_chunks = ts // _CH

    # ---- Prologue: hoist every SMEM scalar read out of the chunk loop. ----
    w1 = [[w1_ref[j, k] for k in range(4)] for j in range(8)]
    b1 = [b1_ref[j] for j in range(8)]
    w2 = [[w2_ref[j, k] for k in range(8)] for j in range(8)]
    b2 = [b2_ref[j] for j in range(8)]
    w3 = [[w3_ref[j, k] for k in range(8)] for j in range(3)]
    b3 = [b3_ref[j] for j in range(3)]

    def chunk(c, carry):
        s = pl.multiple_of(c * _CH, _CH)
        xs = [x_ref[k, pl.ds(s, _CH), :] for k in range(4)]       # 4 x (16,128)

        # Layer 1: 4 -> 8, ReLU
        h1 = []
        for j in range(8):
            acc = xs[0] * w1[j][0]
            for k in range(1, 4):
                acc = acc + xs[k] * w1[j][k]
            h1.append(jnp.maximum(acc + b1[j], 0.0))

        # Layer 2: 8 -> 8, ReLU
        h2 = []
        for j in range(8):
            acc = h1[0] * w2[j][0]
            for k in range(1, 8):
                acc = acc + h1[k] * w2[j][k]
            h2.append(jnp.maximum(acc + b2[j], 0.0))

        # Layer 3: 8 -> 3 (no activation)
        for j in range(3):
            acc = h2[0] * w3[j][0]
            for k in range(1, 8):
                acc = acc + h2[k] * w3[j][k]
            o_ref[j, pl.ds(s, _CH), :] = acc + b3[j]

        return carry

    lax.fori_loop(0, n_chunks, chunk, 0)


def location_model_forward_fm(x_fm, params, *, block_rows=262144):
    """Feature-major forward: x_fm of shape (4, B) -> output (3, B)."""
    f_in, B = x_fm.shape
    assert f_in == 4, x_fm.shape

    # Sublane-groups per grid block (TS): multiple of the chunk size, large
    # enough to amortize the ~0.35 us/step grid overhead, capped so the
    # double-buffered (x, out) blocks fit v7x's scoped-VMEM default.
    ts = max(_CH, min(block_rows // _LANES, _round_up(pl.cdiv(B, _LANES), _CH)))
    ts = min(_round_up(ts, _CH), _MAX_TS)
    assert ts % _CH == 0
    tile_rows = ts * _LANES
    Bp = _round_up(B, tile_rows)
    if Bp != B:
        x_fm = jnp.pad(x_fm, ((0, 0), (0, Bp - B)))  # zero-pad tail block

    x3 = x_fm.reshape(4, Bp // _LANES, _LANES)
    num_blocks = (Bp // _LANES) // ts

    w1, b1 = params["w1"], params["b1"]
    w2, b2 = params["w2"], params["b2"]
    w3, b3 = params["w3"], params["b3"]

    smem_spec = pl.BlockSpec(memory_space=pltpu.MemorySpace.SMEM)
    weight_bytes = sum(int(p.size) * 4 for p in (w1, b1, w2, b2, w3, b3))
    cost = pl.CostEstimate(
        flops=2 * Bp * (4 * 8 + 8 * 8 + 8 * 3),
        transcendentals=0,
        bytes_accessed=Bp * (4 + 3) * 4 + weight_bytes,
    )

    out3 = pl.pallas_call(
        _mlp_kernel,
        out_shape=jax.ShapeDtypeStruct((3, Bp // _LANES, _LANES), jnp.float32),
        grid=(num_blocks,),
        in_specs=[smem_spec] * 6
        + [pl.BlockSpec((4, ts, _LANES), lambda i: (0, i, 0))],
        out_specs=pl.BlockSpec((3, ts, _LANES), lambda i: (0, i, 0)),
        compiler_params=pltpu.CompilerParams(
            dimension_semantics=("parallel",),
        ),
        cost_estimate=cost,
    )(w1, b1, w2, b2, w3, b3, x3)

    return out3.reshape(3, Bp)[:, :B]


def location_model_forward(x, params, *, block_rows=262144):
    """PyTorch-contract forward: x (B, 4) float32 -> (B, 3) float32.

    Note: this path pays two XLA transposes for the (B,4)<->(4,B) relayout;
    callers holding feature-major activations should use
    location_model_forward_fm directly.
    """
    out_fm = location_model_forward_fm(
        jnp.transpose(x), params, block_rows=block_rows
    )
    return jnp.transpose(out_fm)


def init_params(key):
    """PyTorch nn.Linear-style init: W (out, in), b (out,), U[-1/sqrt(fan_in), +]."""
    dims = [(4, 8), (8, 8), (8, 3)]
    params = {}
    for idx, (fan_in, fan_out) in enumerate(dims, start=1):
        key, kw, kb = jax.random.split(key, 3)
        bound = 1.0 / (fan_in ** 0.5)
        params[f"w{idx}"] = jax.random.uniform(
            kw, (fan_out, fan_in), jnp.float32, minval=-bound, maxval=bound)
        params[f"b{idx}"] = jax.random.uniform(
            kb, (fan_out,), jnp.float32, minval=-bound, maxval=bound)
    return params


def _reference(x, p):
    h1 = jnp.maximum(x @ p["w1"].T + p["b1"], 0.0)
    h2 = jnp.maximum(h1 @ p["w2"].T + p["b2"], 0.0)
    return h2 @ p["w3"].T + p["b3"]


if __name__ == "__main__":
    key = jax.random.PRNGKey(0)
    key, kx = jax.random.split(key)
    B = 200  # small, deliberately not a multiple of 128 to exercise padding
    x = jax.random.normal(kx, (B, 4), jnp.float32)
    params = init_params(key)

    out = jax.block_until_ready(location_model_forward(x, params))
    ref = _reference(x, params)

    assert out.shape == (B, 3), out.shape
    assert jnp.allclose(out, ref, atol=1e-5, rtol=1e-5), "mismatch vs reference"
    print("KERNEL_OK")
</pallas_src>

<mosaic_0001>
module attributes {stable_mosaic.version = 11 : i64} {
  func.func @_mlp_kernel(%arg0: i32, %arg1: memref<8x4xf32, #tpu.memory_space<smem>>, %arg2: memref<8xf32, #tpu.memory_space<smem>>, %arg3: memref<8x8xf32, #tpu.memory_space<smem>>, %arg4: memref<8xf32, #tpu.memory_space<smem>>, %arg5: memref<3x8xf32, #tpu.memory_space<smem>>, %arg6: memref<3xf32, #tpu.memory_space<smem>>, %arg7: memref<4x16x128xf32, #tpu.memory_space<vmem>>, %arg8: memref<3x16x128xf32, #tpu.memory_space<vmem>>) attributes {dimension_semantics = [#tpu.dimension_semantics<parallel>], iteration_bounds = array<i64: 1>, scalar_prefetch = 0 : i64, scratch_operands = 0 : i64, tpu.core_type = #tpu.core_type<tc>, window_params = [{transform_indices = @transform_0, window_bounds = array<i64: 8, 4>}, {transform_indices = @transform_1, window_bounds = array<i64: 8>}, {transform_indices = @transform_2, window_bounds = array<i64: 8, 8>}, {transform_indices = @transform_3, window_bounds = array<i64: 8>}, {transform_indices = @transform_4, window_bounds = array<i64: 3, 8>}, {transform_indices = @transform_5, window_bounds = array<i64: 3>}, {transform_indices = @transform_6, window_bounds = array<i64: 4, 16, 128>}, {transform_indices = @transform_7, window_bounds = array<i64: 3, 16, 128>}]} {
    %c0 = arith.constant 0 : index
    %c0_0 = arith.constant 0 : index
    %0 = memref.load %arg1[%c0, %c0_0] : memref<8x4xf32, #tpu.memory_space<smem>>
    %c0_1 = arith.constant 0 : index
    %c1 = arith.constant 1 : index
    %1 = memref.load %arg1[%c0_1, %c1] : memref<8x4xf32, #tpu.memory_space<smem>>
    %c0_2 = arith.constant 0 : index
    %c2 = arith.constant 2 : index
    %2 = memref.load %arg1[%c0_2, %c2] : memref<8x4xf32, #tpu.memory_space<smem>>
    %c0_3 = arith.constant 0 : index
    %c3 = arith.constant 3 : index
    %3 = memref.load %arg1[%c0_3, %c3] : memref<8x4xf32, #tpu.memory_space<smem>>
    %c1_4 = arith.constant 1 : index
    %c0_5 = arith.constant 0 : index
    %4 = memref.load %arg1[%c1_4, %c0_5] : memref<8x4xf32, #tpu.memory_space<smem>>
    %c1_6 = arith.constant 1 : index
    %c1_7 = arith.constant 1 : index
    %5 = memref.load %arg1[%c1_6, %c1_7] : memref<8x4xf32, #tpu.memory_space<smem>>
    %c1_8 = arith.constant 1 : index
    %c2_9 = arith.constant 2 : index
    %6 = memref.load %arg1[%c1_8, %c2_9] : memref<8x4xf32, #tpu.memory_space<smem>>
    %c1_10 = arith.constant 1 : index
    %c3_11 = arith.constant 3 : index
    %7 = memref.load %arg1[%c1_10, %c3_11] : memref<8x4xf32, #tpu.memory_space<smem>>
    %c2_12 = arith.constant 2 : index
    %c0_13 = arith.constant 0 : index
    %8 = memref.load %arg1[%c2_12, %c0_13] : memref<8x4xf32, #tpu.memory_space<smem>>
    %c2_14 = arith.constant 2 : index
    %c1_15 = arith.constant 1 : index
    %9 = memref.load %arg1[%c2_14, %c1_15] : memref<8x4xf32, #tpu.memory_space<smem>>
    %c2_16 = arith.constant 2 : index
    %c2_17 = arith.constant 2 : index
    %10 = memref.load %arg1[%c2_16, %c2_17] : memref<8x4xf32, #tpu.memory_space<smem>>
    %c2_18 = arith.constant 2 : index
    %c3_19 = arith.constant 3 : index
    %11 = memref.load %arg1[%c2_18, %c3_19] : memref<8x4xf32, #tpu.memory_space<smem>>
    %c3_20 = arith.constant 3 : index
    %c0_21 = arith.constant 0 : index
    %12 = memref.load %arg1[%c3_20, %c0_21] : memref<8x4xf32, #tpu.memory_space<smem>>
    %c3_22 = arith.constant 3 : index
    %c1_23 = arith.constant 1 : index
    %13 = memref.load %arg1[%c3_22, %c1_23] : memref<8x4xf32, #tpu.memory_space<smem>>
    %c3_24 = arith.constant 3 : index
    %c2_25 = arith.constant 2 : index
    %14 = memref.load %arg1[%c3_24, %c2_25] : memref<8x4xf32, #tpu.memory_space<smem>>
    %c3_26 = arith.constant 3 : index
    %c3_27 = arith.constant 3 : index
    %15 = memref.load %arg1[%c3_26, %c3_27] : memref<8x4xf32, #tpu.memory_space<smem>>
    %c4 = arith.constant 4 : index
    %c0_28 = arith.constant 0 : index
    %16 = memref.load %arg1[%c4, %c0_28] : memref<8x4xf32, #tpu.memory_space<smem>>
    %c4_29 = arith.constant 4 : index
    %c1_30 = arith.constant 1 : index
    %17 = memref.load %arg1[%c4_29, %c1_30] : memref<8x4xf32, #tpu.memory_space<smem>>
    %c4_31 = arith.constant 4 : index
    %c2_32 = arith.constant 2 : index
    %18 = memref.load %arg1[%c4_31, %c2_32] : memref<8x4xf32, #tpu.memory_space<smem>>
    %c4_33 = arith.constant 4 : index
    %c3_34 = arith.constant 3 : index
    %19 = memref.load %arg1[%c4_33, %c3_34] : memref<8x4xf32, #tpu.memory_space<smem>>
    %c5 = arith.constant 5 : index
    %c0_35 = arith.constant 0 : index
    %20 = memref.load %arg1[%c5, %c0_35] : memref<8x4xf32, #tpu.memory_space<smem>>
    %c5_36 = arith.constant 5 : index
    %c1_37 = arith.constant 1 : index
    %21 = memref.load %arg1[%c5_36, %c1_37] : memref<8x4xf32, #tpu.memory_space<smem>>
    %c5_38 = arith.constant 5 : index
    %c2_39 = arith.constant 2 : index
    %22 = memref.load %arg1[%c5_38, %c2_39] : memref<8x4xf32, #tpu.memory_space<smem>>
    %c5_40 = arith.constant 5 : index
    %c3_41 = arith.constant 3 : index
    %23 = memref.load %arg1[%c5_40, %c3_41] : memref<8x4xf32, #tpu.memory_space<smem>>
    %c6 = arith.constant 6 : index
    %c0_42 = arith.constant 0 : index
    %24 = memref.load %arg1[%c6, %c0_42] : memref<8x4xf32, #tpu.memory_space<smem>>
    %c6_43 = arith.constant 6 : index
    %c1_44 = arith.constant 1 : index
    %25 = memref.load %arg1[%c6_43, %c1_44] : memref<8x4xf32, #tpu.memory_space<smem>>
    %c6_45 = arith.constant 6 : index
    %c2_46 = arith.constant 2 : index
    %26 = memref.load %arg1[%c6_45, %c2_46] : memref<8x4xf32, #tpu.memory_space<smem>>
    %c6_47 = arith.constant 6 : index
    %c3_48 = arith.constant 3 : index
    %27 = memref.load %arg1[%c6_47, %c3_48] : memref<8x4xf32, #tpu.memory_space<smem>>
    %c7 = arith.constant 7 : index
    %c0_49 = arith.constant 0 : index
    %28 = memref.load %arg1[%c7, %c0_49] : memref<8x4xf32, #tpu.memory_space<smem>>
    %c7_50 = arith.constant 7 : index
    %c1_51 = arith.constant 1 : index
    %29 = memref.load %arg1[%c7_50, %c1_51] : memref<8x4xf32, #tpu.memory_space<smem>>
    %c7_52 = arith.constant 7 : index
    %c2_53 = arith.constant 2 : index
    %30 = memref.load %arg1[%c7_52, %c2_53] : memref<8x4xf32, #tpu.memory_space<smem>>
    %c7_54 = arith.constant 7 : index
    %c3_55 = arith.constant 3 : index
    %31 = memref.load %arg1[%c7_54, %c3_55] : memref<8x4xf32, #tpu.memory_space<smem>>
    %c0_56 = arith.constant 0 : index
    %32 = memref.load %arg2[%c0_56] : memref<8xf32, #tpu.memory_space<smem>>
    %c1_57 = arith.constant 1 : index
    %33 = memref.load %arg2[%c1_57] : memref<8xf32, #tpu.memory_space<smem>>
    %c2_58 = arith.constant 2 : index
    %34 = memref.load %arg2[%c2_58] : memref<8xf32, #tpu.memory_space<smem>>
    %c3_59 = arith.constant 3 : index
    %35 = memref.load %arg2[%c3_59] : memref<8xf32, #tpu.memory_space<smem>>
    %c4_60 = arith.constant 4 : index
    %36 = memref.load %arg2[%c4_60] : memref<8xf32, #tpu.memory_space<smem>>
    %c5_61 = arith.constant 5 : index
    %37 = memref.load %arg2[%c5_61] : memref<8xf32, #tpu.memory_space<smem>>
    %c6_62 = arith.constant 6 : index
    %38 = memref.load %arg2[%c6_62] : memref<8xf32, #tpu.memory_space<smem>>
    %c7_63 = arith.constant 7 : index
    %39 = memref.load %arg2[%c7_63] : memref<8xf32, #tpu.memory_space<smem>>
    %c0_64 = arith.constant 0 : index
    %c0_65 = arith.constant 0 : index
    %40 = memref.load %arg3[%c0_64, %c0_65] : memref<8x8xf32, #tpu.memory_space<smem>>
    %c0_66 = arith.constant 0 : index
    %c1_67 = arith.constant 1 : index
    %41 = memref.load %arg3[%c0_66, %c1_67] : memref<8x8xf32, #tpu.memory_space<smem>>
    %c0_68 = arith.constant 0 : index
    %c2_69 = arith.constant 2 : index
    %42 = memref.load %arg3[%c0_68, %c2_69] : memref<8x8xf32, #tpu.memory_space<smem>>
    %c0_70 = arith.constant 0 : index
    %c3_71 = arith.constant 3 : index
    %43 = memref.load %arg3[%c0_70, %c3_71] : memref<8x8xf32, #tpu.memory_space<smem>>
    %c0_72 = arith.constant 0 : index
    %c4_73 = arith.constant 4 : index
    %44 = memref.load %arg3[%c0_72, %c4_73] : memref<8x8xf32, #tpu.memory_space<smem>>
    %c0_74 = arith.constant 0 : index
    %c5_75 = arith.constant 5 : index
    %45 = memref.load %arg3[%c0_74, %c5_75] : memref<8x8xf32, #tpu.memory_space<smem>>
    %c0_76 = arith.constant 0 : index
    %c6_77 = arith.constant 6 : index
    %46 = memref.load %arg3[%c0_76, %c6_77] : memref<8x8xf32, #tpu.memory_space<smem>>
    %c0_78 = arith.constant 0 : index
    %c7_79 = arith.constant 7 : index
    %47 = memref.load %arg3[%c0_78, %c7_79] : memref<8x8xf32, #tpu.memory_space<smem>>
    %c1_80 = arith.constant 1 : index
    %c0_81 = arith.constant 0 : index
    %48 = memref.load %arg3[%c1_80, %c0_81] : memref<8x8xf32, #tpu.memory_space<smem>>
    %c1_82 = arith.constant 1 : index
    %c1_83 = arith.constant 1 : index
    %49 = memref.load %arg3[%c1_82, %c1_83] : memref<8x8xf32, #tpu.memory_space<smem>>
    %c1_84 = arith.constant 1 : index
    %c2_85 = arith.constant 2 : index
    %50 = memref.load %arg3[%c1_84, %c2_85] : memref<8x8xf32, #tpu.memory_space<smem>>
    %c1_86 = arith.constant 1 : index
    %c3_87 = arith.constant 3 : index
    %51 = memref.load %arg3[%c1_86, %c3_87] : memref<8x8xf32, #tpu.memory_space<smem>>
    %c1_88 = arith.constant 1 : index
    %c4_89 = arith.constant 4 : index
    %52 = memref.load %arg3[%c1_88, %c4_89] : memref<8x8xf32, #tpu.memory_space<smem>>
    %c1_90 = arith.constant 1 : index
    %c5_91 = arith.constant 5 : index
    %53 = memref.load %arg3[%c1_90, %c5_91] : memref<8x8xf32, #tpu.memory_space<smem>>
    %c1_92 = arith.constant 1 : index
    %c6_93 = arith.constant 6 : index
    %54 = memref.load %arg3[%c1_92, %c6_93] : memref<8x8xf32, #tpu.memory_space<smem>>
    %c1_94 = arith.constant 1 : index
    %c7_95 = arith.constant 7 : index
    %55 = memref.load %arg3[%c1_94, %c7_95] : memref<8x8xf32, #tpu.memory_space<smem>>
    %c2_96 = arith.constant 2 : index
    %c0_97 = arith.constant 0 : index
    %56 = memref.load %arg3[%c2_96, %c0_97] : memref<8x8xf32, #tpu.memory_space<smem>>
    %c2_98 = arith.constant 2 : index
    %c1_99 = arith.constant 1 : index
    %57 = memref.load %arg3[%c2_98, %c1_99] : memref<8x8xf32, #tpu.memory_space<smem>>
    %c2_100 = arith.constant 2 : index
    %c2_101 = arith.constant 2 : index
    %58 = memref.load %arg3[%c2_100, %c2_101] : memref<8x8xf32, #tpu.memory_space<smem>>
    %c2_102 = arith.constant 2 : index
    %c3_103 = arith.constant 3 : index
    %59 = memref.load %arg3[%c2_102, %c3_103] : memref<8x8xf32, #tpu.memory_space<smem>>
    %c2_104 = arith.constant 2 : index
    %c4_105 = arith.constant 4 : index
    %60 = memref.load %arg3[%c2_104, %c4_105] : memref<8x8xf32, #tpu.memory_space<smem>>
    %c2_106 = arith.constant 2 : index
    %c5_107 = arith.constant 5 : index
    %61 = memref.load %arg3[%c2_106, %c5_107] : memref<8x8xf32, #tpu.memory_space<smem>>
    %c2_108 = arith.constant 2 : index
    %c6_109 = arith.constant 6 : index
    %62 = memref.load %arg3[%c2_108, %c6_109] : memref<8x8xf32, #tpu.memory_space<smem>>
    %c2_110 = arith.constant 2 : index
    %c7_111 = arith.constant 7 : index
    %63 = memref.load %arg3[%c2_110, %c7_111] : memref<8x8xf32, #tpu.memory_space<smem>>
    %c3_112 = arith.constant 3 : index
    %c0_113 = arith.constant 0 : index
    %64 = memref.load %arg3[%c3_112, %c0_113] : memref<8x8xf32, #tpu.memory_space<smem>>
    %c3_114 = arith.constant 3 : index
    %c1_115 = arith.constant 1 : index
    %65 = memref.load %arg3[%c3_114, %c1_115] : memref<8x8xf32, #tpu.memory_space<smem>>
    %c3_116 = arith.constant 3 : index
    %c2_117 = arith.constant 2 : index
    %66 = memref.load %arg3[%c3_116, %c2_117] : memref<8x8xf32, #tpu.memory_space<smem>>
    %c3_118 = arith.constant 3 : index
    %c3_119 = arith.constant 3 : index
    %67 = memref.load %arg3[%c3_118, %c3_119] : memref<8x8xf32, #tpu.memory_space<smem>>
    %c3_120 = arith.constant 3 : index
    %c4_121 = arith.constant 4 : index
    %68 = memref.load %arg3[%c3_120, %c4_121] : memref<8x8xf32, #tpu.memory_space<smem>>
    %c3_122 = arith.constant 3 : index
    %c5_123 = arith.constant 5 : index
    %69 = memref.load %arg3[%c3_122, %c5_123] : memref<8x8xf32, #tpu.memory_space<smem>>
    %c3_124 = arith.constant 3 : index
    %c6_125 = arith.constant 6 : index
    %70 = memref.load %arg3[%c3_124, %c6_125] : memref<8x8xf32, #tpu.memory_space<smem>>
    %c3_126 = arith.constant 3 : index
    %c7_127 = arith.constant 7 : index
    %71 = memref.load %arg3[%c3_126, %c7_127] : memref<8x8xf32, #tpu.memory_space<smem>>
    %c4_128 = arith.constant 4 : index
    %c0_129 = arith.constant 0 : index
    %72 = memref.load %arg3[%c4_128, %c0_129] : memref<8x8xf32, #tpu.memory_space<smem>>
    %c4_130 = arith.constant 4 : index
    %c1_131 = arith.constant 1 : index
    %73 = memref.load %arg3[%c4_130, %c1_131] : memref<8x8xf32, #tpu.memory_space<smem>>
    %c4_132 = arith.constant 4 : index
    %c2_133 = arith.constant 2 : index
    %74 = memref.load %arg3[%c4_132, %c2_133] : memref<8x8xf32, #tpu.memory_space<smem>>
    %c4_134 = arith.constant 4 : index
    %c3_135 = arith.constant 3 : index
    %75 = memref.load %arg3[%c4_134, %c3_135] : memref<8x8xf32, #tpu.memory_space<smem>>
    %c4_136 = arith.constant 4 : index
    %c4_137 = arith.constant 4 : index
    %76 = memref.load %arg3[%c4_136, %c4_137] : memref<8x8xf32, #tpu.memory_space<smem>>
    %c4_138 = arith.constant 4 : index
    %c5_139 = arith.constant 5 : index
    %77 = memref.load %arg3[%c4_138, %c5_139] : memref<8x8xf32, #tpu.memory_space<smem>>
    %c4_140 = arith.constant 4 : index
    %c6_141 = arith.constant 6 : index
    %78 = memref.load %arg3[%c4_140, %c6_141] : memref<8x8xf32, #tpu.memory_space<smem>>
    %c4_142 = arith.constant 4 : index
    %c7_143 = arith.constant 7 : index
    %79 = memref.load %arg3[%c4_142, %c7_143] : memref<8x8xf32, #tpu.memory_space<smem>>
    %c5_144 = arith.constant 5 : index
    %c0_145 = arith.constant 0 : index
    %80 = memref.load %arg3[%c5_144, %c0_145] : memref<8x8xf32, #tpu.memory_space<smem>>
    %c5_146 = arith.constant 5 : index
    %c1_147 = arith.constant 1 : index
    %81 = memref.load %arg3[%c5_146, %c1_147] : memref<8x8xf32, #tpu.memory_space<smem>>
    %c5_148 = arith.constant 5 : index
    %c2_149 = arith.constant 2 : index
    %82 = memref.load %arg3[%c5_148, %c2_149] : memref<8x8xf32, #tpu.memory_space<smem>>
    %c5_150 = arith.constant 5 : index
    %c3_151 = arith.constant 3 : index
    %83 = memref.load %arg3[%c5_150, %c3_151] : memref<8x8xf32, #tpu.memory_space<smem>>
    %c5_152 = arith.constant 5 : index
    %c4_153 = arith.constant 4 : index
    %84 = memref.load %arg3[%c5_152, %c4_153] : memref<8x8xf32, #tpu.memory_space<smem>>
    %c5_154 = arith.constant 5 : index
    %c5_155 = arith.constant 5 : index
    %85 = memref.load %arg3[%c5_154, %c5_155] : memref<8x8xf32, #tpu.memory_space<smem>>
    %c5_156 = arith.constant 5 : index
    %c6_157 = arith.constant 6 : index
    %86 = memref.load %arg3[%c5_156, %c6_157] : memref<8x8xf32, #tpu.memory_space<smem>>
    %c5_158 = arith.constant 5 : index
    %c7_159 = arith.constant 7 : index
    %87 = memref.load %arg3[%c5_158, %c7_159] : memref<8x8xf32, #tpu.memory_space<smem>>
    %c6_160 = arith.constant 6 : index
    %c0_161 = arith.constant 0 : index
    %88 = memref.load %arg3[%c6_160, %c0_161] : memref<8x8xf32, #tpu.memory_space<smem>>
    %c6_162 = arith.constant 6 : index
    %c1_163 = arith.constant 1 : index
    %89 = memref.load %arg3[%c6_162, %c1_163] : memref<8x8xf32, #tpu.memory_space<smem>>
    %c6_164 = arith.constant 6 : index
    %c2_165 = arith.constant 2 : index
    %90 = memref.load %arg3[%c6_164, %c2_165] : memref<8x8xf32, #tpu.memory_space<smem>>
    %c6_166 = arith.constant 6 : index
    %c3_167 = arith.constant 3 : index
    %91 = memref.load %arg3[%c6_166, %c3_167] : memref<8x8xf32, #tpu.memory_space<smem>>
    %c6_168 = arith.constant 6 : index
    %c4_169 = arith.constant 4 : index
    %92 = memref.load %arg3[%c6_168, %c4_169] : memref<8x8xf32, #tpu.memory_space<smem>>
    %c6_170 = arith.constant 6 : index
    %c5_171 = arith.constant 5 : index
    %93 = memref.load %arg3[%c6_170, %c5_171] : memref<8x8xf32, #tpu.memory_space<smem>>
    %c6_172 = arith.constant 6 : index
    %c6_173 = arith.constant 6 : index
    %94 = memref.load %arg3[%c6_172, %c6_173] : memref<8x8xf32, #tpu.memory_space<smem>>
    %c6_174 = arith.constant 6 : index
    %c7_175 = arith.constant 7 : index
    %95 = memref.load %arg3[%c6_174, %c7_175] : memref<8x8xf32, #tpu.memory_space<smem>>
    %c7_176 = arith.constant 7 : index
    %c0_177 = arith.constant 0 : index
    %96 = memref.load %arg3[%c7_176, %c0_177] : memref<8x8xf32, #tpu.memory_space<smem>>
    %c7_178 = arith.constant 7 : index
    %c1_179 = arith.constant 1 : index
    %97 = memref.load %arg3[%c7_178, %c1_179] : memref<8x8xf32, #tpu.memory_space<smem>>
    %c7_180 = arith.constant 7 : index
    %c2_181 = arith.constant 2 : index
    %98 = memref.load %arg3[%c7_180, %c2_181] : memref<8x8xf32, #tpu.memory_space<smem>>
    %c7_182 = arith.constant 7 : index
    %c3_183 = arith.constant 3 : index
    %99 = memref.load %arg3[%c7_182, %c3_183] : memref<8x8xf32, #tpu.memory_space<smem>>
    %c7_184 = arith.constant 7 : index
    %c4_185 = arith.constant 4 : index
    %100 = memref.load %arg3[%c7_184, %c4_185] : memref<8x8xf32, #tpu.memory_space<smem>>
    %c7_186 = arith.constant 7 : index
    %c5_187 = arith.constant 5 : index
    %101 = memref.load %arg3[%c7_186, %c5_187] : memref<8x8xf32, #tpu.memory_space<smem>>
    %c7_188 = arith.constant 7 : index
    %c6_189 = arith.constant 6 : index
    %102 = memref.load %arg3[%c7_188, %c6_189] : memref<8x8xf32, #tpu.memory_space<smem>>
    %c7_190 = arith.constant 7 : index
    %c7_191 = arith.constant 7 : index
    %103 = memref.load %arg3[%c7_190, %c7_191] : memref<8x8xf32, #tpu.memory_space<smem>>
    %c0_192 = arith.constant 0 : index
    %104 = memref.load %arg4[%c0_192] : memref<8xf32, #tpu.memory_space<smem>>
    %c1_193 = arith.constant 1 : index
    %105 = memref.load %arg4[%c1_193] : memref<8xf32, #tpu.memory_space<smem>>
    %c2_194 = arith.constant 2 : index
    %106 = memref.load %arg4[%c2_194] : memref<8xf32, #tpu.memory_space<smem>>
    %c3_195 = arith.constant 3 : index
    %107 = memref.load %arg4[%c3_195] : memref<8xf32, #tpu.memory_space<smem>>
    %c4_196 = arith.constant 4 : index
    %108 = memref.load %arg4[%c4_196] : memref<8xf32, #tpu.memory_space<smem>>
    %c5_197 = arith.constant 5 : index
    %109 = memref.load %arg4[%c5_197] : memref<8xf32, #tpu.memory_space<smem>>
    %c6_198 = arith.constant 6 : index
    %110 = memref.load %arg4[%c6_198] : memref<8xf32, #tpu.memory_space<smem>>
    %c7_199 = arith.constant 7 : index
    %111 = memref.load %arg4[%c7_199] : memref<8xf32, #tpu.memory_space<smem>>
    %c0_200 = arith.constant 0 : index
    %c0_201 = arith.constant 0 : index
    %112 = memref.load %arg5[%c0_200, %c0_201] : memref<3x8xf32, #tpu.memory_space<smem>>
    %c0_202 = arith.constant 0 : index
    %c1_203 = arith.constant 1 : index
    %113 = memref.load %arg5[%c0_202, %c1_203] : memref<3x8xf32, #tpu.memory_space<smem>>
    %c0_204 = arith.constant 0 : index
    %c2_205 = arith.constant 2 : index
    %114 = memref.load %arg5[%c0_204, %c2_205] : memref<3x8xf32, #tpu.memory_space<smem>>
    %c0_206 = arith.constant 0 : index
    %c3_207 = arith.constant 3 : index
    %115 = memref.load %arg5[%c0_206, %c3_207] : memref<3x8xf32, #tpu.memory_space<smem>>
    %c0_208 = arith.constant 0 : index
    %c4_209 = arith.constant 4 : index
    %116 = memref.load %arg5[%c0_208, %c4_209] : memref<3x8xf32, #tpu.memory_space<smem>>
    %c0_210 = arith.constant 0 : index
    %c5_211 = arith.constant 5 : index
    %117 = memref.load %arg5[%c0_210, %c5_211] : memref<3x8xf32, #tpu.memory_space<smem>>
    %c0_212 = arith.constant 0 : index
    %c6_213 = arith.constant 6 : index
    %118 = memref.load %arg5[%c0_212, %c6_213] : memref<3x8xf32, #tpu.memory_space<smem>>
    %c0_214 = arith.constant 0 : index
    %c7_215 = arith.constant 7 : index
    %119 = memref.load %arg5[%c0_214, %c7_215] : memref<3x8xf32, #tpu.memory_space<smem>>
    %c1_216 = arith.constant 1 : index
    %c0_217 = arith.constant 0 : index
    %120 = memref.load %arg5[%c1_216, %c0_217] : memref<3x8xf32, #tpu.memory_space<smem>>
    %c1_218 = arith.constant 1 : index
    %c1_219 = arith.constant 1 : index
    %121 = memref.load %arg5[%c1_218, %c1_219] : memref<3x8xf32, #tpu.memory_space<smem>>
    %c1_220 = arith.constant 1 : index
    %c2_221 = arith.constant 2 : index
    %122 = memref.load %arg5[%c1_220, %c2_221] : memref<3x8xf32, #tpu.memory_space<smem>>
    %c1_222 = arith.constant 1 : index
    %c3_223 = arith.constant 3 : index
    %123 = memref.load %arg5[%c1_222, %c3_223] : memref<3x8xf32, #tpu.memory_space<smem>>
    %c1_224 = arith.constant 1 : index
    %c4_225 = arith.constant 4 : index
    %124 = memref.load %arg5[%c1_224, %c4_225] : memref<3x8xf32, #tpu.memory_space<smem>>
    %c1_226 = arith.constant 1 : index
    %c5_227 = arith.constant 5 : index
    %125 = memref.load %arg5[%c1_226, %c5_227] : memref<3x8xf32, #tpu.memory_space<smem>>
    %c1_228 = arith.constant 1 : index
    %c6_229 = arith.constant 6 : index
    %126 = memref.load %arg5[%c1_228, %c6_229] : memref<3x8xf32, #tpu.memory_space<smem>>
    %c1_230 = arith.constant 1 : index
    %c7_231 = arith.constant 7 : index
    %127 = memref.load %arg5[%c1_230, %c7_231] : memref<3x8xf32, #tpu.memory_space<smem>>
    %c2_232 = arith.constant 2 : index
    %c0_233 = arith.constant 0 : index
    %128 = memref.load %arg5[%c2_232, %c0_233] : memref<3x8xf32, #tpu.memory_space<smem>>
    %c2_234 = arith.constant 2 : index
    %c1_235 = arith.constant 1 : index
    %129 = memref.load %arg5[%c2_234, %c1_235] : memref<3x8xf32, #tpu.memory_space<smem>>
    %c2_236 = arith.constant 2 : index
    %c2_237 = arith.constant 2 : index
    %130 = memref.load %arg5[%c2_236, %c2_237] : memref<3x8xf32, #tpu.memory_space<smem>>
    %c2_238 = arith.constant 2 : index
    %c3_239 = arith.constant 3 : index
    %131 = memref.load %arg5[%c2_238, %c3_239] : memref<3x8xf32, #tpu.memory_space<smem>>
    %c2_240 = arith.constant 2 : index
    %c4_241 = arith.constant 4 : index
    %132 = memref.load %arg5[%c2_240, %c4_241] : memref<3x8xf32, #tpu.memory_space<smem>>
    %c2_242 = arith.constant 2 : index
    %c5_243 = arith.constant 5 : index
    %133 = memref.load %arg5[%c2_242, %c5_243] : memref<3x8xf32, #tpu.memory_space<smem>>
    %c2_244 = arith.constant 2 : index
    %c6_245 = arith.constant 6 : index
    %134 = memref.load %arg5[%c2_244, %c6_245] : memref<3x8xf32, #tpu.memory_space<smem>>
    %c2_246 = arith.constant 2 : index
    %c7_247 = arith.constant 7 : index
    %135 = memref.load %arg5[%c2_246, %c7_247] : memref<3x8xf32, #tpu.memory_space<smem>>
    %c0_248 = arith.constant 0 : index
    %136 = memref.load %arg6[%c0_248] : memref<3xf32, #tpu.memory_space<smem>>
    %c1_249 = arith.constant 1 : index
    %137 = memref.load %arg6[%c1_249] : memref<3xf32, #tpu.memory_space<smem>>
    %c2_250 = arith.constant 2 : index
    %138 = memref.load %arg6[%c2_250] : memref<3xf32, #tpu.memory_space<smem>>
    %c0_i32 = arith.constant 0 : i32
    %c16_i32 = arith.constant 16 : i32
    %139 = arith.muli %c0_i32, %c16_i32 : i32
    %140 = tpu.assume_multiple %139, 16 : i32
    %c0_251 = arith.constant 0 : index
    %141 = arith.index_cast %140 : i32 to index
    %c0_252 = arith.constant 0 : index
    %142 = vector.load %arg7[%c0_251, %141, %c0_252] : memref<4x16x128xf32, #tpu.memory_space<vmem>>, vector<1x16x128xf32>
    %143 = vector.shape_cast %142 : vector<1x16x128xf32> to vector<16x128xf32>
    %c1_253 = arith.constant 1 : index
    %144 = arith.index_cast %140 : i32 to index
    %c0_254 = arith.constant 0 : index
    %145 = vector.load %arg7[%c1_253, %144, %c0_254] : memref<4x16x128xf32, #tpu.memory_space<vmem>>, vector<1x16x128xf32>
    %146 = vector.shape_cast %145 : vector<1x16x128xf32> to vector<16x128xf32>
    %c2_255 = arith.constant 2 : index
    %147 = arith.index_cast %140 : i32 to index
    %c0_256 = arith.constant 0 : index
    %148 = vector.load %arg7[%c2_255, %147, %c0_256] : memref<4x16x128xf32, #tpu.memory_space<vmem>>, vector<1x16x128xf32>
    %149 = vector.shape_cast %148 : vector<1x16x128xf32> to vector<16x128xf32>
    %c3_257 = arith.constant 3 : index
    %150 = arith.index_cast %140 : i32 to index
    %c0_258 = arith.constant 0 : index
    %151 = vector.load %arg7[%c3_257, %150, %c0_258] : memref<4x16x128xf32, #tpu.memory_space<vmem>>, vector<1x16x128xf32>
    %152 = vector.shape_cast %151 : vector<1x16x128xf32> to vector<16x128xf32>
    %153 = vector.broadcast %0 : f32 to vector<16x128xf32>
    %154 = arith.mulf %143, %153 : vector<16x128xf32>
    %155 = vector.broadcast %1 : f32 to vector<16x128xf32>
    %156 = arith.mulf %146, %155 : vector<16x128xf32>
    %157 = arith.addf %154, %156 : vector<16x128xf32>
    %158 = vector.broadcast %2 : f32 to vector<16x128xf32>
    %159 = arith.mulf %149, %158 : vector<16x128xf32>
    %160 = arith.addf %157, %159 : vector<16x128xf32>
    %161 = vector.broadcast %3 : f32 to vector<16x128xf32>
    %162 = arith.mulf %152, %161 : vector<16x128xf32>
    %163 = arith.addf %160, %162 : vector<16x128xf32>
    %164 = vector.broadcast %32 : f32 to vector<16x128xf32>
    %165 = arith.addf %163, %164 : vector<16x128xf32>
    %cst = arith.constant 0.000000e+00 : f32
    %166 = vector.broadcast %cst : f32 to vector<16x128xf32>
    %167 = arith.maximumf %165, %166 : vector<16x128xf32>
    %168 = vector.broadcast %4 : f32 to vector<16x128xf32>
    %169 = arith.mulf %143, %168 : vector<16x128xf32>
    %170 = vector.broadcast %5 : f32 to vector<16x128xf32>
    %171 = arith.mulf %146, %170 : vector<16x128xf32>
    %172 = arith.addf %169, %171 : vector<16x128xf32>
    %173 = vector.broadcast %6 : f32 to vector<16x128xf32>
    %174 = arith.mulf %149, %173 : vector<16x128xf32>
    %175 = arith.addf %172, %174 : vector<16x128xf32>
    %176 = vector.broadcast %7 : f32 to vector<16x128xf32>
    %177 = arith.mulf %152, %176 : vector<16x128xf32>
    %178 = arith.addf %175, %177 : vector<16x128xf32>
    %179 = vector.broadcast %33 : f32 to vector<16x128xf32>
    %180 = arith.addf %178, %179 : vector<16x128xf32>
    %cst_259 = arith.constant 0.000000e+00 : f32
    %181 = vector.broadcast %cst_259 : f32 to vector<16x128xf32>
    %182 = arith.maximumf %180, %181 : vector<16x128xf32>
    %183 = vector.broadcast %8 : f32 to vector<16x128xf32>
    %184 = arith.mulf %143, %183 : vector<16x128xf32>
    %185 = vector.broadcast %9 : f32 to vector<16x128xf32>
    %186 = arith.mulf %146, %185 : vector<16x128xf32>
    %187 = arith.addf %184, %186 : vector<16x128xf32>
    %188 = vector.broadcast %10 : f32 to vector<16x128xf32>
    %189 = arith.mulf %149, %188 : vector<16x128xf32>
    %190 = arith.addf %187, %189 : vector<16x128xf32>
    %191 = vector.broadcast %11 : f32 to vector<16x128xf32>
    %192 = arith.mulf %152, %191 : vector<16x128xf32>
    %193 = arith.addf %190, %192 : vector<16x128xf32>
    %194 = vector.broadcast %34 : f32 to vector<16x128xf32>
    %195 = arith.addf %193, %194 : vector<16x128xf32>
    %cst_260 = arith.constant 0.000000e+00 : f32
    %196 = vector.broadcast %cst_260 : f32 to vector<16x128xf32>
    %197 = arith.maximumf %195, %196 : vector<16x128xf32>
    %198 = vector.broadcast %12 : f32 to vector<16x128xf32>
    %199 = arith.mulf %143, %198 : vector<16x128xf32>
    %200 = vector.broadcast %13 : f32 to vector<16x128xf32>
    %201 = arith.mulf %146, %200 : vector<16x128xf32>
    %202 = arith.addf %199, %201 : vector<16x128xf32>
    %203 = vector.broadcast %14 : f32 to vector<16x128xf32>
    %204 = arith.mulf %149, %203 : vector<16x128xf32>
    %205 = arith.addf %202, %204 : vector<16x128xf32>
    %206 = vector.broadcast %15 : f32 to vector<16x128xf32>
    %207 = arith.mulf %152, %206 : vector<16x128xf32>
    %208 = arith.addf %205, %207 : vector<16x128xf32>
    %209 = vector.broadcast %35 : f32 to vector<16x128xf32>
    %210 = arith.addf %208, %209 : vector<16x128xf32>
    %cst_261 = arith.constant 0.000000e+00 : f32
    %211 = vector.broadcast %cst_261 : f32 to vector<16x128xf32>
    %212 = arith.maximumf %210, %211 : vector<16x128xf32>
    %213 = vector.broadcast %16 : f32 to vector<16x128xf32>
    %214 = arith.mulf %143, %213 : vector<16x128xf32>
    %215 = vector.broadcast %17 : f32 to vector<16x128xf32>
    %216 = arith.mulf %146, %215 : vector<16x128xf32>
    %217 = arith.addf %214, %216 : vector<16x128xf32>
    %218 = vector.broadcast %18 : f32 to vector<16x128xf32>
    %219 = arith.mulf %149, %218 : vector<16x128xf32>
    %220 = arith.addf %217, %219 : vector<16x128xf32>
    %221 = vector.broadcast %19 : f32 to vector<16x128xf32>
    %222 = arith.mulf %152, %221 : vector<16x128xf32>
    %223 = arith.addf %220, %222 : vector<16x128xf32>
    %224 = vector.broadcast %36 : f32 to vector<16x128xf32>
    %225 = arith.addf %223, %224 : vector<16x128xf32>
    %cst_262 = arith.constant 0.000000e+00 : f32
    %226 = vector.broadcast %cst_262 : f32 to vector<16x128xf32>
    %227 = arith.maximumf %225, %226 : vector<16x128xf32>
    %228 = vector.broadcast %20 : f32 to vector<16x128xf32>
    %229 = arith.mulf %143, %228 : vector<16x128xf32>
    %230 = vector.broadcast %21 : f32 to vector<16x128xf32>
    %231 = arith.mulf %146, %230 : vector<16x128xf32>
    %232 = arith.addf %229, %231 : vector<16x128xf32>
    %233 = vector.broadcast %22 : f32 to vector<16x128xf32>
    %234 = arith.mulf %149, %233 : vector<16x128xf32>
    %235 = arith.addf %232, %234 : vector<16x128xf32>
    %236 = vector.broadcast %23 : f32 to vector<16x128xf32>
    %237 = arith.mulf %152, %236 : vector<16x128xf32>
    %238 = arith.addf %235, %237 : vector<16x128xf32>
    %239 = vector.broadcast %37 : f32 to vector<16x128xf32>
    %240 = arith.addf %238, %239 : vector<16x128xf32>
    %cst_263 = arith.constant 0.000000e+00 : f32
    %241 = vector.broadcast %cst_263 : f32 to vector<16x128xf32>
    %242 = arith.maximumf %240, %241 : vector<16x128xf32>
    %243 = vector.broadcast %24 : f32 to vector<16x128xf32>
    %244 = arith.mulf %143, %243 : vector<16x128xf32>
    %245 = vector.broadcast %25 : f32 to vector<16x128xf32>
    %246 = arith.mulf %146, %245 : vector<16x128xf32>
    %247 = arith.addf %244, %246 : vector<16x128xf32>
    %248 = vector.broadcast %26 : f32 to vector<16x128xf32>
    %249 = arith.mulf %149, %248 : vector<16x128xf32>
    %250 = arith.addf %247, %249 : vector<16x128xf32>
    %251 = vector.broadcast %27 : f32 to vector<16x128xf32>
    %252 = arith.mulf %152, %251 : vector<16x128xf32>
    %253 = arith.addf %250, %252 : vector<16x128xf32>
    %254 = vector.broadcast %38 : f32 to vector<16x128xf32>
    %255 = arith.addf %253, %254 : vector<16x128xf32>
    %cst_264 = arith.constant 0.000000e+00 : f32
    %256 = vector.broadcast %cst_264 : f32 to vector<16x128xf32>
    %257 = arith.maximumf %255, %256 : vector<16x128xf32>
    %258 = vector.broadcast %28 : f32 to vector<16x128xf32>
    %259 = arith.mulf %143, %258 : vector<16x128xf32>
    %260 = vector.broadcast %29 : f32 to vector<16x128xf32>
    %261 = arith.mulf %146, %260 : vector<16x128xf32>
    %262 = arith.addf %259, %261 : vector<16x128xf32>
    %263 = vector.broadcast %30 : f32 to vector<16x128xf32>
    %264 = arith.mulf %149, %263 : vector<16x128xf32>
    %265 = arith.addf %262, %264 : vector<16x128xf32>
    %266 = vector.broadcast %31 : f32 to vector<16x128xf32>
    %267 = arith.mulf %152, %266 : vector<16x128xf32>
    %268 = arith.addf %265, %267 : vector<16x128xf32>
    %269 = vector.broadcast %39 : f32 to vector<16x128xf32>
    %270 = arith.addf %268, %269 : vector<16x128xf32>
    %cst_265 = arith.constant 0.000000e+00 : f32
    %271 = vector.broadcast %cst_265 : f32 to vector<16x128xf32>
    %272 = arith.maximumf %270, %271 : vector<16x128xf32>
    %273 = vector.broadcast %40 : f32 to vector<16x128xf32>
    %274 = arith.mulf %167, %273 : vector<16x128xf32>
    %275 = vector.broadcast %41 : f32 to vector<16x128xf32>
    %276 = arith.mulf %182, %275 : vector<16x128xf32>
    %277 = arith.addf %274, %276 : vector<16x128xf32>
    %278 = vector.broadcast %42 : f32 to vector<16x128xf32>
    %279 = arith.mulf %197, %278 : vector<16x128xf32>
    %280 = arith.addf %277, %279 : vector<16x128xf32>
    %281 = vector.broadcast %43 : f32 to vector<16x128xf32>
    %282 = arith.mulf %212, %281 : vector<16x128xf32>
    %283 = arith.addf %280, %282 : vector<16x128xf32>
    %284 = vector.broadcast %44 : f32 to vector<16x128xf32>
    %285 = arith.mulf %227, %284 : vector<16x128xf32>
    %286 = arith.addf %283, %285 : vector<16x128xf32>
    %287 = vector.broadcast %45 : f32 to vector<16x128xf32>
    %288 = arith.mulf %242, %287 : vector<16x128xf32>
    %289 = arith.addf %286, %288 : vector<16x128xf32>
    %290 = vector.broadcast %46 : f32 to vector<16x128xf32>
    %291 = arith.mulf %257, %290 : vector<16x128xf32>
    %292 = arith.addf %289, %291 : vector<16x128xf32>
    %293 = vector.broadcast %47 : f32 to vector<16x128xf32>
    %294 = arith.mulf %272, %293 : vector<16x128xf32>
    %295 = arith.addf %292, %294 : vector<16x128xf32>
    %296 = vector.broadcast %104 : f32 to vector<16x128xf32>
    %297 = arith.addf %295, %296 : vector<16x128xf32>
    %cst_266 = arith.constant 0.000000e+00 : f32
    %298 = vector.broadcast %cst_266 : f32 to vector<16x128xf32>
    %299 = arith.maximumf %297, %298 : vector<16x128xf32>
    %300 = vector.broadcast %48 : f32 to vector<16x128xf32>
    %301 = arith.mulf %167, %300 : vector<16x128xf32>
    %302 = vector.broadcast %49 : f32 to vector<16x128xf32>
    %303 = arith.mulf %182, %302 : vector<16x128xf32>
    %304 = arith.addf %301, %303 : vector<16x128xf32>
    %305 = vector.broadcast %50 : f32 to vector<16x128xf32>
    %306 = arith.mulf %197, %305 : vector<16x128xf32>
    %307 = arith.addf %304, %306 : vector<16x128xf32>
    %308 = vector.broadcast %51 : f32 to vector<16x128xf32>
    %309 = arith.mulf %212, %308 : vector<16x128xf32>
    %310 = arith.addf %307, %309 : vector<16x128xf32>
    %311 = vector.broadcast %52 : f32 to vector<16x128xf32>
    %312 = arith.mulf %227, %311 : vector<16x128xf32>
    %313 = arith.addf %310, %312 : vector<16x128xf32>
    %314 = vector.broadcast %53 : f32 to vector<16x128xf32>
    %315 = arith.mulf %242, %314 : vector<16x128xf32>
    %316 = arith.addf %313, %315 : vector<16x128xf32>
    %317 = vector.broadcast %54 : f32 to vector<16x128xf32>
    %318 = arith.mulf %257, %317 : vector<16x128xf32>
    %319 = arith.addf %316, %318 : vector<16x128xf32>
    %320 = vector.broadcast %55 : f32 to vector<16x128xf32>
    %321 = arith.mulf %272, %320 : vector<16x128xf32>
    %322 = arith.addf %319, %321 : vector<16x128xf32>
    %323 = vector.broadcast %105 : f32 to vector<16x128xf32>
    %324 = arith.addf %322, %323 : vector<16x128xf32>
    %cst_267 = arith.constant 0.000000e+00 : f32
    %325 = vector.broadcast %cst_267 : f32 to vector<16x128xf32>
    %326 = arith.maximumf %324, %325 : vector<16x128xf32>
    %327 = vector.broadcast %56 : f32 to vector<16x128xf32>
    %328 = arith.mulf %167, %327 : vector<16x128xf32>
    %329 = vector.broadcast %57 : f32 to vector<16x128xf32>
    %330 = arith.mulf %182, %329 : vector<16x128xf32>
    %331 = arith.addf %328, %330 : vector<16x128xf32>
    %332 = vector.broadcast %58 : f32 to vector<16x128xf32>
    %333 = arith.mulf %197, %332 : vector<16x128xf32>
    %334 = arith.addf %331, %333 : vector<16x128xf32>
    %335 = vector.broadcast %59 : f32 to vector<16x128xf32>
    %336 = arith.mulf %212, %335 : vector<16x128xf32>
    %337 = arith.addf %334, %336 : vector<16x128xf32>
    %338 = vector.broadcast %60 : f32 to vector<16x128xf32>
    %339 = arith.mulf %227, %338 : vector<16x128xf32>
    %340 = arith.addf %337, %339 : vector<16x128xf32>
    %341 = vector.broadcast %61 : f32 to vector<16x128xf32>
    %342 = arith.mulf %242, %341 : vector<16x128xf32>
    %343 = arith.addf %340, %342 : vector<16x128xf32>
    %344 = vector.broadcast %62 : f32 to vector<16x128xf32>
    %345 = arith.mulf %257, %344 : vector<16x128xf32>
    %346 = arith.addf %343, %345 : vector<16x128xf32>
    %347 = vector.broadcast %63 : f32 to vector<16x128xf32>
    %348 = arith.mulf %272, %347 : vector<16x128xf32>
    %349 = arith.addf %346, %348 : vector<16x128xf32>
    %350 = vector.broadcast %106 : f32 to vector<16x128xf32>
    %351 = arith.addf %349, %350 : vector<16x128xf32>
    %cst_268 = arith.constant 0.000000e+00 : f32
    %352 = vector.broadcast %cst_268 : f32 to vector<16x128xf32>
    %353 = arith.maximumf %351, %352 : vector<16x128xf32>
    %354 = vector.broadcast %64 : f32 to vector<16x128xf32>
    %355 = arith.mulf %167, %354 : vector<16x128xf32>
    %356 = vector.broadcast %65 : f32 to vector<16x128xf32>
    %357 = arith.mulf %182, %356 : vector<16x128xf32>
    %358 = arith.addf %355, %357 : vector<16x128xf32>
    %359 = vector.broadcast %66 : f32 to vector<16x128xf32>
    %360 = arith.mulf %197, %359 : vector<16x128xf32>
    %361 = arith.addf %358, %360 : vector<16x128xf32>
    %362 = vector.broadcast %67 : f32 to vector<16x128xf32>
    %363 = arith.mulf %212, %362 : vector<16x128xf32>
    %364 = arith.addf %361, %363 : vector<16x128xf32>
    %365 = vector.broadcast %68 : f32 to vector<16x128xf32>
    %366 = arith.mulf %227, %365 : vector<16x128xf32>
    %367 = arith.addf %364, %366 : vector<16x128xf32>
    %368 = vector.broadcast %69 : f32 to vector<16x128xf32>
    %369 = arith.mulf %242, %368 : vector<16x128xf32>
    %370 = arith.addf %367, %369 : vector<16x128xf32>
    %371 = vector.broadcast %70 : f32 to vector<16x128xf32>
    %372 = arith.mulf %257, %371 : vector<16x128xf32>
    %373 = arith.addf %370, %372 : vector<16x128xf32>
    %374 = vector.broadcast %71 : f32 to vector<16x128xf32>
    %375 = arith.mulf %272, %374 : vector<16x128xf32>
    %376 = arith.addf %373, %375 : vector<16x128xf32>
    %377 = vector.broadcast %107 : f32 to vector<16x128xf32>
    %378 = arith.addf %376, %377 : vector<16x128xf32>
    %cst_269 = arith.constant 0.000000e+00 : f32
    %379 = vector.broadcast %cst_269 : f32 to vector<16x128xf32>
    %380 = arith.maximumf %378, %379 : vector<16x128xf32>
    %381 = vector.broadcast %72 : f32 to vector<16x128xf32>
    %382 = arith.mulf %167, %381 : vector<16x128xf32>
    %383 = vector.broadcast %73 : f32 to vector<16x128xf32>
    %384 = arith.mulf %182, %383 : vector<16x128xf32>
    %385 = arith.addf %382, %384 : vector<16x128xf32>
    %386 = vector.broadcast %74 : f32 to vector<16x128xf32>
    %387 = arith.mulf %197, %386 : vector<16x128xf32>
    %388 = arith.addf %385, %387 : vector<16x128xf32>
    %389 = vector.broadcast %75 : f32 to vector<16x128xf32>
    %390 = arith.mulf %212, %389 : vector<16x128xf32>
    %391 = arith.addf %388, %390 : vector<16x128xf32>
    %392 = vector.broadcast %76 : f32 to vector<16x128xf32>
    %393 = arith.mulf %227, %392 : vector<16x128xf32>
    %394 = arith.addf %391, %393 : vector<16x128xf32>
    %395 = vector.broadcast %77 : f32 to vector<16x128xf32>
    %396 = arith.mulf %242, %395 : vector<16x128xf32>
    %397 = arith.addf %394, %396 : vector<16x128xf32>
    %398 = vector.broadcast %78 : f32 to vector<16x128xf32>
    %399 = arith.mulf %257, %398 : vector<16x128xf32>
    %400 = arith.addf %397, %399 : vector<16x128xf32>
    %401 = vector.broadcast %79 : f32 to vector<16x128xf32>
    %402 = arith.mulf %272, %401 : vector<16x128xf32>
    %403 = arith.addf %400, %402 : vector<16x128xf32>
    %404 = vector.broadcast %108 : f32 to vector<16x128xf32>
    %405 = arith.addf %403, %404 : vector<16x128xf32>
    %cst_270 = arith.constant 0.000000e+00 : f32
    %406 = vector.broadcast %cst_270 : f32 to vector<16x128xf32>
    %407 = arith.maximumf %405, %406 : vector<16x128xf32>
    %408 = vector.broadcast %80 : f32 to vector<16x128xf32>
    %409 = arith.mulf %167, %408 : vector<16x128xf32>
    %410 = vector.broadcast %81 : f32 to vector<16x128xf32>
    %411 = arith.mulf %182, %410 : vector<16x128xf32>
    %412 = arith.addf %409, %411 : vector<16x128xf32>
    %413 = vector.broadcast %82 : f32 to vector<16x128xf32>
    %414 = arith.mulf %197, %413 : vector<16x128xf32>
    %415 = arith.addf %412, %414 : vector<16x128xf32>
    %416 = vector.broadcast %83 : f32 to vector<16x128xf32>
    %417 = arith.mulf %212, %416 : vector<16x128xf32>
    %418 = arith.addf %415, %417 : vector<16x128xf32>
    %419 = vector.broadcast %84 : f32 to vector<16x128xf32>
    %420 = arith.mulf %227, %419 : vector<16x128xf32>
    %421 = arith.addf %418, %420 : vector<16x128xf32>
    %422 = vector.broadcast %85 : f32 to vector<16x128xf32>
    %423 = arith.mulf %242, %422 : vector<16x128xf32>
    %424 = arith.addf %421, %423 : vector<16x128xf32>
    %425 = vector.broadcast %86 : f32 to vector<16x128xf32>
    %426 = arith.mulf %257, %425 : vector<16x128xf32>
    %427 = arith.addf %424, %426 : vector<16x128xf32>
    %428 = vector.broadcast %87 : f32 to vector<16x128xf32>
    %429 = arith.mulf %272, %428 : vector<16x128xf32>
    %430 = arith.addf %427, %429 : vector<16x128xf32>
    %431 = vector.broadcast %109 : f32 to vector<16x128xf32>
    %432 = arith.addf %430, %431 : vector<16x128xf32>
    %cst_271 = arith.constant 0.000000e+00 : f32
    %433 = vector.broadcast %cst_271 : f32 to vector<16x128xf32>
    %434 = arith.maximumf %432, %433 : vector<16x128xf32>
    %435 = vector.broadcast %88 : f32 to vector<16x128xf32>
    %436 = arith.mulf %167, %435 : vector<16x128xf32>
    %437 = vector.broadcast %89 : f32 to vector<16x128xf32>
    %438 = arith.mulf %182, %437 : vector<16x128xf32>
    %439 = arith.addf %436, %438 : vector<16x128xf32>
    %440 = vector.broadcast %90 : f32 to vector<16x128xf32>
    %441 = arith.mulf %197, %440 : vector<16x128xf32>
    %442 = arith.addf %439, %441 : vector<16x128xf32>
    %443 = vector.broadcast %91 : f32 to vector<16x128xf32>
    %444 = arith.mulf %212, %443 : vector<16x128xf32>
    %445 = arith.addf %442, %444 : vector<16x128xf32>
    %446 = vector.broadcast %92 : f32 to vector<16x128xf32>
    %447 = arith.mulf %227, %446 : vector<16x128xf32>
    %448 = arith.addf %445, %447 : vector<16x128xf32>
    %449 = vector.broadcast %93 : f32 to vector<16x128xf32>
    %450 = arith.mulf %242, %449 : vector<16x128xf32>
    %451 = arith.addf %448, %450 : vector<16x128xf32>
    %452 = vector.broadcast %94 : f32 to vector<16x128xf32>
    %453 = arith.mulf %257, %452 : vector<16x128xf32>
    %454 = arith.addf %451, %453 : vector<16x128xf32>
    %455 = vector.broadcast %95 : f32 to vector<16x128xf32>
    %456 = arith.mulf %272, %455 : vector<16x128xf32>
    %457 = arith.addf %454, %456 : vector<16x128xf32>
    %458 = vector.broadcast %110 : f32 to vector<16x128xf32>
    %459 = arith.addf %457, %458 : vector<16x128xf32>
    %cst_272 = arith.constant 0.000000e+00 : f32
    %460 = vector.broadcast %cst_272 : f32 to vector<16x128xf32>
    %461 = arith.maximumf %459, %460 : vector<16x128xf32>
    %462 = vector.broadcast %96 : f32 to vector<16x128xf32>
    %463 = arith.mulf %167, %462 : vector<16x128xf32>
    %464 = vector.broadcast %97 : f32 to vector<16x128xf32>
    %465 = arith.mulf %182, %464 : vector<16x128xf32>
    %466 = arith.addf %463, %465 : vector<16x128xf32>
    %467 = vector.broadcast %98 : f32 to vector<16x128xf32>
    %468 = arith.mulf %197, %467 : vector<16x128xf32>
    %469 = arith.addf %466, %468 : vector<16x128xf32>
    %470 = vector.broadcast %99 : f32 to vector<16x128xf32>
    %471 = arith.mulf %212, %470 : vector<16x128xf32>
    %472 = arith.addf %469, %471 : vector<16x128xf32>
    %473 = vector.broadcast %100 : f32 to vector<16x128xf32>
    %474 = arith.mulf %227, %473 : vector<16x128xf32>
    %475 = arith.addf %472, %474 : vector<16x128xf32>
    %476 = vector.broadcast %101 : f32 to vector<16x128xf32>
    %477 = arith.mulf %242, %476 : vector<16x128xf32>
    %478 = arith.addf %475, %477 : vector<16x128xf32>
    %479 = vector.broadcast %102 : f32 to vector<16x128xf32>
    %480 = arith.mulf %257, %479 : vector<16x128xf32>
    %481 = arith.addf %478, %480 : vector<16x128xf32>
    %482 = vector.broadcast %103 : f32 to vector<16x128xf32>
    %483 = arith.mulf %272, %482 : vector<16x128xf32>
    %484 = arith.addf %481, %483 : vector<16x128xf32>
    %485 = vector.broadcast %111 : f32 to vector<16x128xf32>
    %486 = arith.addf %484, %485 : vector<16x128xf32>
    %cst_273 = arith.constant 0.000000e+00 : f32
    %487 = vector.broadcast %cst_273 : f32 to vector<16x128xf32>
    %488 = arith.maximumf %486, %487 : vector<16x128xf32>
    %489 = vector.broadcast %112 : f32 to vector<16x128xf32>
    %490 = arith.mulf %299, %489 : vector<16x128xf32>
    %491 = vector.broadcast %113 : f32 to vector<16x128xf32>
    %492 = arith.mulf %326, %491 : vector<16x128xf32>
    %493 = arith.addf %490, %492 : vector<16x128xf32>
    %494 = vector.broadcast %114 : f32 to vector<16x128xf32>
    %495 = arith.mulf %353, %494 : vector<16x128xf32>
    %496 = arith.addf %493, %495 : vector<16x128xf32>
    %497 = vector.broadcast %115 : f32 to vector<16x128xf32>
    %498 = arith.mulf %380, %497 : vector<16x128xf32>
    %499 = arith.addf %496, %498 : vector<16x128xf32>
    %500 = vector.broadcast %116 : f32 to vector<16x128xf32>
    %501 = arith.mulf %407, %500 : vector<16x128xf32>
    %502 = arith.addf %499, %501 : vector<16x128xf32>
    %503 = vector.broadcast %117 : f32 to vector<16x128xf32>
    %504 = arith.mulf %434, %503 : vector<16x128xf32>
    %505 = arith.addf %502, %504 : vector<16x128xf32>
    %506 = vector.broadcast %118 : f32 to vector<16x128xf32>
    %507 = arith.mulf %461, %506 : vector<16x128xf32>
    %508 = arith.addf %505, %507 : vector<16x128xf32>
    %509 = vector.broadcast %119 : f32 to vector<16x128xf32>
    %510 = arith.mulf %488, %509 : vector<16x128xf32>
    %511 = arith.addf %508, %510 : vector<16x128xf32>
    %512 = vector.broadcast %136 : f32 to vector<16x128xf32>
    %513 = arith.addf %511, %512 : vector<16x128xf32>
    %c0_274 = arith.constant 0 : index
    %514 = arith.index_cast %140 : i32 to index
    %c0_275 = arith.constant 0 : index
    %515 = vector.load %arg8[%c0_274, %514, %c0_275] : memref<3x16x128xf32, #tpu.memory_space<vmem>>, vector<1x16x128xf32>
    %516 = vector.shape_cast %515 : vector<1x16x128xf32> to vector<16x128xf32>
    %517 = vector.shape_cast %513 : vector<16x128xf32> to vector<1x16x128xf32>
    tpu.vector_store %arg8[%c0_274, %514, %c0_275], %517 {strides = array<i32>} : memref<3x16x128xf32, #tpu.memory_space<vmem>>, vector<1x16x128xf32>,
    %518 = vector.broadcast %120 : f32 to vector<16x128xf32>
    %519 = arith.mulf %299, %518 : vector<16x128xf32>
    %520 = vector.broadcast %121 : f32 to vector<16x128xf32>
    %521 = arith.mulf %326, %520 : vector<16x128xf32>
    %522 = arith.addf %519, %521 : vector<16x128xf32>
    %523 = vector.broadcast %122 : f32 to vector<16x128xf32>
    %524 = arith.mulf %353, %523 : vector<16x128xf32>
    %525 = arith.addf %522, %524 : vector<16x128xf32>
    %526 = vector.broadcast %123 : f32 to vector<16x128xf32>
    %527 = arith.mulf %380, %526 : vector<16x128xf32>
    %528 = arith.addf %525, %527 : vector<16x128xf32>
    %529 = vector.broadcast %124 : f32 to vector<16x128xf32>
    %530 = arith.mulf %407, %529 : vector<16x128xf32>
    %531 = arith.addf %528, %530 : vector<16x128xf32>
    %532 = vector.broadcast %125 : f32 to vector<16x128xf32>
    %533 = arith.mulf %434, %532 : vector<16x128xf32>
    %534 = arith.addf %531, %533 : vector<16x128xf32>
    %535 = vector.broadcast %126 : f32 to vector<16x128xf32>
    %536 = arith.mulf %461, %535 : vector<16x128xf32>
    %537 = arith.addf %534, %536 : vector<16x128xf32>
    %538 = vector.broadcast %127 : f32 to vector<16x128xf32>
    %539 = arith.mulf %488, %538 : vector<16x128xf32>
    %540 = arith.addf %537, %539 : vector<16x128xf32>
    %541 = vector.broadcast %137 : f32 to vector<16x128xf32>
    %542 = arith.addf %540, %541 : vector<16x128xf32>
    %c1_276 = arith.constant 1 : index
    %543 = arith.index_cast %140 : i32 to index
    %c0_277 = arith.constant 0 : index
    %544 = vector.load %arg8[%c1_276, %543, %c0_277] : memref<3x16x128xf32, #tpu.memory_space<vmem>>, vector<1x16x128xf32>
    %545 = vector.shape_cast %544 : vector<1x16x128xf32> to vector<16x128xf32>
    %546 = vector.shape_cast %542 : vector<16x128xf32> to vector<1x16x128xf32>
    tpu.vector_store %arg8[%c1_276, %543, %c0_277], %546 {strides = array<i32>} : memref<3x16x128xf32, #tpu.memory_space<vmem>>, vector<1x16x128xf32>,
    %547 = vector.broadcast %128 : f32 to vector<16x128xf32>
    %548 = arith.mulf %299, %547 : vector<16x128xf32>
    %549 = vector.broadcast %129 : f32 to vector<16x128xf32>
    %550 = arith.mulf %326, %549 : vector<16x128xf32>
    %551 = arith.addf %548, %550 : vector<16x128xf32>
    %552 = vector.broadcast %130 : f32 to vector<16x128xf32>
    %553 = arith.mulf %353, %552 : vector<16x128xf32>
    %554 = arith.addf %551, %553 : vector<16x128xf32>
    %555 = vector.broadcast %131 : f32 to vector<16x128xf32>
    %556 = arith.mulf %380, %555 : vector<16x128xf32>
    %557 = arith.addf %554, %556 : vector<16x128xf32>
    %558 = vector.broadcast %132 : f32 to vector<16x128xf32>
    %559 = arith.mulf %407, %558 : vector<16x128xf32>
    %560 = arith.addf %557, %559 : vector<16x128xf32>
    %561 = vector.broadcast %133 : f32 to vector<16x128xf32>
    %562 = arith.mulf %434, %561 : vector<16x128xf32>
    %563 = arith.addf %560, %562 : vector<16x128xf32>
    %564 = vector.broadcast %134 : f32 to vector<16x128xf32>
    %565 = arith.mulf %461, %564 : vector<16x128xf32>
    %566 = arith.addf %563, %565 : vector<16x128xf32>
    %567 = vector.broadcast %135 : f32 to vector<16x128xf32>
    %568 = arith.mulf %488, %567 : vector<16x128xf32>
    %569 = arith.addf %566, %568 : vector<16x128xf32>
    %570 = vector.broadcast %138 : f32 to vector<16x128xf32>
    %571 = arith.addf %569, %570 : vector<16x128xf32>
    %c2_278 = arith.constant 2 : index
    %572 = arith.index_cast %140 : i32 to index
    %c0_279 = arith.constant 0 : index
    %573 = vector.load %arg8[%c2_278, %572, %c0_279] : memref<3x16x128xf32, #tpu.memory_space<vmem>>, vector<1x16x128xf32>
    %574 = vector.shape_cast %573 : vector<1x16x128xf32> to vector<16x128xf32>
    %575 = vector.shape_cast %571 : vector<16x128xf32> to vector<1x16x128xf32>
    tpu.vector_store %arg8[%c2_278, %572, %c0_279], %575 {strides = array<i32>} : memref<3x16x128xf32, #tpu.memory_space<vmem>>, vector<1x16x128xf32>,
    %c1_i32 = arith.constant 1 : i32
    return
  }
  func.func @transform_0(%arg0: i32) -> (i32, i32) {
    %c0_i32 = arith.constant 0 : i32
    %c0_i32_0 = arith.constant 0 : i32
    %c0_i32_1 = arith.constant 0 : i32
    return %c0_i32, %c0_i32_0 : i32, i32
  }
  func.func @transform_1(%arg0: i32) -> i32 {
    %c0_i32 = arith.constant 0 : i32
    %c0_i32_0 = arith.constant 0 : i32
    return %c0_i32 : i32
  }
  func.func @transform_2(%arg0: i32) -> (i32, i32) {
    %c0_i32 = arith.constant 0 : i32
    %c0_i32_0 = arith.constant 0 : i32
    %c0_i32_1 = arith.constant 0 : i32
    return %c0_i32, %c0_i32_0 : i32, i32
  }
  func.func @transform_3(%arg0: i32) -> i32 {
    %c0_i32 = arith.constant 0 : i32
    %c0_i32_0 = arith.constant 0 : i32
    return %c0_i32 : i32
  }
  func.func @transform_4(%arg0: i32) -> (i32, i32) {
    %c0_i32 = arith.constant 0 : i32
    %c0_i32_0 = arith.constant 0 : i32
    %c0_i32_1 = arith.constant 0 : i32
    return %c0_i32, %c0_i32_0 : i32, i32
  }
  func.func @transform_5(%arg0: i32) -> i32 {
    %c0_i32 = arith.constant 0 : i32
    %c0_i32_0 = arith.constant 0 : i32
    return %c0_i32 : i32
  }
  func.func @transform_6(%arg0: i32) -> (i32, i32, i32) {
    %c0_i32 = arith.constant 0 : i32
    %c0_i32_0 = arith.constant 0 : i32
    %c0_i32_1 = arith.constant 0 : i32
    return %c0_i32, %arg0, %c0_i32_0 : i32, i32, i32
  }
  func.func @transform_7(%arg0: i32) -> (i32, i32, i32) {
    %c0_i32 = arith.constant 0 : i32
    %c0_i32_0 = arith.constant 0 : i32
    %c0_i32_1 = arith.constant 0 : i32
    return %c0_i32, %arg0, %c0_i32_0 : i32, i32, i32
  }
}

</mosaic_0001>

<bundles_post_ra>
// kernel: tpu_custom_call.1
= control target key start
LH: loop header
LB: loop body
LE: loop exit
PB: predicated region body
PF: predicated region fallthrough
CT: control target
= control target key end

     0   :  { %12 = vsyncpa [#allocation5], 0  ;;  %s2034_s0 = inlined_call_operand.vmem [shape: f32[8,4], index: 0, kind: input, shape index: {}]   ;;  %s2035_s1 = inlined_call_operand.vmem [shape: f32[8], index: 1, kind: input, shape index: {}]   ;;  %s2036_s2 = inlined_call_operand.vmem [shape: f32[8,8], index: 2, kind: input, shape index: {}]   ;;  %s2037_s3 = inlined_call_operand.vmem [shape: f32[8], index: 3, kind: input, shape index: {}]   ;;  %s2038_s4 = inlined_call_operand.vmem [shape: f32[3,8], index: 4, kind: input, shape index: {}]   ;;  %s2039_s5 = inlined_call_operand.vmem [shape: f32[3], index: 5, kind: input, shape index: {}]   ;;  %s2040_s6 = inlined_call_operand.hbm [shape: f32[4,16,128], index: 6, kind: input, shape index: {}]   ;;  %s2041_s7 = inlined_call_operand.hbm [shape: f32[3,16,128], index: 7, kind: output, shape index: {}]  }
   0x1   :  { %13 = vsyncpa [#allocation7], 0 }
   0x2   :  { %14 = vsyncpa [#allocation10], 0 }
   0x3   :  { %15 = vsyncpa [#allocation13], 0 }
   0x4   :  { %16 = vsyncpa [#allocation3], 0  ;;  %s32_s26 = sshll.u32 %s2035_s1, 4  ;;  %s33_s26 = int_to_ptr.vmem [resolvable:$true] %s32_s26 }
   0x5   :  { %17 = vsyncpa [#allocation4], 0  ;;  %s50_s29 = sshll.u32 %s2037_s3, 4  ;;  %s1229_s30 = smov [#allocation6]   ;;  %s51_s29 = int_to_ptr.vmem [resolvable:$true] %s50_s29 }
   0x6   :  { %35 = dma.vmem_to_smem %s33_s26, 16, %s1229_s30, [#allocation7]  }
   0x7   :  { %s1230_s8 = smov [#allocation9]   ;;  %s23_s11 = sshll.u32 %s2034_s0, 4  ;;  %s24_s11 = int_to_ptr.vmem [resolvable:$true] %s23_s11 }
   0x8   :  { %53 = dma.vmem_to_smem %s51_s29, 16, %s1230_s8, [#allocation10]  }
   0x9   :  { %s41_s1 = sshll.u32 %s2036_s2, 4  ;;  %s1231_s14 = smov [#allocation2]   ;;  %s42_s1 = int_to_ptr.vmem [resolvable:$true] %s41_s1 }
   0xa   :  { %26 = dma.vmem_to_smem %s24_s11, 128, %s1231_s14, [#allocation5]  }
   0xb   :  { %s1232_s15 = smov [#allocation8]   ;;  %s59_s17 = sshll.u32 %s2038_s4, 4  ;;  %s60_s17 = int_to_ptr.vmem [resolvable:$true] %s59_s17 }
   0xc   :  { %44 = dma.vmem_to_smem %s42_s1, 128, %s1232_s15, [#allocation7]  }
   0xd   :  { %s68_s20 = sshll.u32 %s2039_s5, 4  ;;  %s1233_s0 = smov [#allocation11]   ;;  %s69_s20 = int_to_ptr.vmem [resolvable:$true] %s68_s20 }
   0xe   :  { %62 = dma.vmem_to_smem %s60_s17, 64, %s1233_s0, [#allocation10]  }
   0xf   :  { %s1234_s21 = smov [#allocation12]   ;;  %s76_s23 = sshll.u32 %s2040_s6, 4  ;;  %s77_s23 = int_to_ptr.hbm [resolvable:$true] %s76_s23 }
  0x10   :  { %71 = dma.vmem_to_smem %s69_s20, 16, %s1234_s21, [#allocation13]  }
  0x11   :  { %s1235_s24 = smov [#allocation14]   ;;  %s1236_s26 = smov 128  }
  0x12   :  { %s78_s25 = sshll.u32 %s1235_s24, 4  ;;  %s1237_s4 = smov 8   ;;  %s79_s25 = int_to_ptr.vmem [resolvable:$true] %s78_s25 }
  0x13   :  { %84 = dma.hbm_to_vmem [thread:$0]  %s77_s23, 1024, %s79_s25, [#allocation3], %s1236_s26, %s1236_s26, %s1237_s4  }
  0x14   :  { %1217 = dma.done.wait [#allocation5], 128  }
  0x15   :  { %1218 = vsyncadd [#allocation5], 4294967168 }
  0x16   :  { %1219 = dma.done.wait [#allocation7], 144  }
  0x17   :  { %1220 = vsyncadd [#allocation7], 4294967152 }
  0x18   :  { %1221 = dma.done.wait [#allocation10], 80  }
  0x19   :  { %1222 = vsyncadd [#allocation10], 4294967216 }
  0x1a   :  { %1223 = dma.done.wait [#allocation13], 16  }
  0x1b   :  { %1224 = vsyncadd [#allocation13], 4294967280 }
  0x1c   :  { %1225 = dma.done.wait [#allocation3], 1024  }
  0x1d   :  { %1226 = vsyncadd [#allocation3], 4294966272 }
  0x1e   :  { %113 = sfence }
  0x1f   :  { %s114_s5 = sld [smem:[#allocation2]]  ;;  %v1315_v0 = vld [vmem:[#allocation14] sm:$0xff]  ;;  %v1317_v1 = vld [vmem:[#allocation14 + $0x8] sm:$0xff]  ;;  %v1319_v2 = vld [vmem:[#allocation14 + $0x10] sm:$0xff] }
  0x20   :  { %s954_s6 = sld [smem:[#allocation2 + $0x1]]  ;;  %v1324_v7 = vld [vmem:[#allocation14 + $0x18] sm:$0xff]  ;;  %v1332_v12 = vld [vmem:[#allocation14 + $0x20] sm:$0xff]  ;;  %v1334_v13 = vld [vmem:[#allocation14 + $0x28] sm:$0xff] }
  0x21   :  { %s957_s27 = sld [smem:[#allocation2 + $0x80]]  ;;  %v1346_v22 = vld [vmem:[#allocation14 + $0x30] sm:$0xff]  ;;  %v1348_v23 = vld [vmem:[#allocation14 + $0x38] sm:$0xff] }
  0x22   :  { %s1303_s28 = sld [smem:[#allocation2 + $0x81]] }
  0x23   :  { %s955_s29 = sld [smem:[#allocation2 + $0x2]] }
  0x24   :  { %s1305_s30 = sld [smem:[#allocation2 + $0x3]] }
  0x25   :  { %s1307_s8 = sld [smem:[#allocation2 + $0x82]]  ;;  %v267_v3 = vstv %s114_s5 }
  0x26   :  { %s1309_s9 = sld [smem:[#allocation2 + $0x83]]  ;;  %v270_v4 = vstv %s954_s6  ;;  %v268_v8 = vmul.f32 %v267_v3, %v1315_v0  ;;  %v269_v9 = vmul.f32 %v267_v3, %v1317_v1 }
  0x27   :  { %s1311_s10 = sld [smem:[#allocation2 + $0x100]]  ;;  %v290_v5 = vstv %s957_s27  ;;  %v271_v10 = vmul.f32 %v270_v4, %v1319_v2  ;;  %v272_v14 = vmul.f32 %v270_v4, %v1324_v7 }
  0x28   :  { %s1313_s11 = sld [smem:[#allocation6]]  ;;  %v293_v6 = vstv %s1303_s28  ;;  %v291_v11 = vmul.f32 %v290_v5, %v1315_v0  ;;  %v292_v16 = vmul.f32 %v290_v5, %v1317_v1 }
  0x29   :  { %s1322_s12 = sld [smem:[#allocation6 + $0x1]]  ;;  %v275_v15 = vstv %s955_s29  ;;  %v294_v17 = vmul.f32 %v293_v6, %v1319_v2  ;;  %v273_v18 = vadd.f32 %v271_v10, %v268_v8  ;;  %v295_v21 = vmul.f32 %v293_v6, %v1324_v7 }
  0x2a   :  { %s1330_s13 = sld [smem:[#allocation2 + $0x101]]  ;;  %v276_v19 = vmul.f32 %v275_v15, %v1332_v12  ;;  %v277_v20 = vmul.f32 %v275_v15, %v1334_v13  ;;  %v274_v24 = vadd.f32 %v272_v14, %v269_v9  ;;  %v280_v25 = vstv %s1305_s30 }
  0x2b   :  { %s1339_s1 = sld [smem:[#allocation2 + $0x102]]  ;;  %v296_v26 = vadd.f32 %v294_v17, %v291_v11  ;;  %v298_v27 = vstv %s1307_s8  ;;  %v281_v29 = vmul.f32 %v280_v25, %v1346_v22  ;;  %v282_v30 = vmul.f32 %v280_v25, %v1348_v23 }
  0x2c   :  { %s1344_s14 = sld [smem:[#allocation2 + $0x103]]  ;;  %v278_v28 = vadd.f32 %v276_v19, %v273_v18  ;;  %v297_v31 = vadd.f32 %v295_v21, %v292_v16  ;;  %v279_v32 = vadd.f32 %v277_v20, %v274_v24  ;;  %v299_v33 = vmul.f32 %v298_v27, %v1332_v12 }
  0x2d   :  { %s1352_s15 = sld [smem:[#allocation2 + $0x180]]  ;;  %v300_v34 = vmul.f32 %v298_v27, %v1334_v13  ;;  %v303_v35 = vstv %s1309_s9  ;;  %v313_v39 = vstv %s1311_s10 }
  0x2e   :  { %s1356_s3 = sld [smem:[#allocation2 + $0x181]]  ;;  %v283_v36 = vadd.f32 %v281_v29, %v278_v28  ;;  %v304_v37 = vmul.f32 %v303_v35, %v1346_v22  ;;  %v305_v38 = vmul.f32 %v303_v35, %v1348_v23  ;;  %v284_v40 = vadd.f32 %v282_v30, %v279_v32 }
  0x2f   :  { %s1361_s16 = sld [smem:[#allocation6 + $0x2]]  ;;  %v285_v41 = vstv %s1313_s11  ;;  %v301_v42 = vadd.f32 %v299_v33, %v296_v26  ;;  %v302_v43 = vadd.f32 %v300_v34, %v297_v31  ;;  %v308_v45 = vstv %s1322_s12 }
  0x30   :  { %s1366_s17 = sld [smem:[#allocation2 + $0x182]]  ;;  %v286_v44 = vadd.f32 %v285_v41, %v283_v36  ;;  %v314_v46 = vmul.f32 %v313_v39, %v1315_v0  ;;  %v315_v47 = vmul.f32 %v313_v39, %v1317_v1  ;;  %v287_v48 = vadd.f32 %v285_v41, %v284_v40 }
  0x31   :  { %s1369_s18 = sld [smem:[#allocation2 + $0x183]]  ;;  %v306_v49 = vadd.f32 %v304_v37, %v301_v42  ;;  %v307_v50 = vadd.f32 %v305_v38, %v302_v43  ;;  %v316_v51 = vstv %s1330_s13  ;;  %v321_v55 = vstv %s1339_s1 }
  0x32   :  { %s1374_s19 = sld [smem:[#allocation6 + $0x3]]  ;;  %v1379_v52 = vmax.f32 %v286_v44, 0.0  ;;  %v317_v53 = vmul.f32 %v316_v51, %v1319_v2  ;;  %v318_v54 = vmul.f32 %v316_v51, %v1324_v7  ;;  %v1386_v56 = vmax.f32 %v287_v48, 0.0 }
  0x33   :  { %s1377_s20 = sld [smem:[#allocation2 + $0x200]]  ;;  %v309_v57 = vadd.f32 %v308_v45, %v306_v49  ;;  %v310_v58 = vadd.f32 %v308_v45, %v307_v50  ;;  %v322_v59 = vmul.f32 %v321_v55, %v1332_v12  ;;  %v323_v62 = vmul.f32 %v321_v55, %v1334_v13 }
  0x34   :  { %s1384_s0 = sld [smem:[#allocation2 + $0x201]]  ;;  %v319_v60 = vadd.f32 %v317_v53, %v314_v46  ;;  %v320_v61 = vadd.f32 %v318_v54, %v315_v47  ;;  %v326_v63 = vstv %s1344_s14  ;;  %v336_v11 = vstv %s1352_s15 }
  0x35   :  { %s1391_s21 = sld [smem:[#allocation2 + $0x202]]  ;;  %v1393_v3 = vmax.f32 %v309_v57, 0.0  ;;  %v1395_v4 = vmax.f32 %v310_v58, 0.0  ;;  %v327_v5 = vmul.f32 %v326_v63, %v1346_v22  ;;  %v328_v6 = vmul.f32 %v326_v63, %v1348_v23 }
  0x36   :  { %s1399_s2 = sld [smem:[#allocation2 + $0x203]]  ;;  %v324_v8 = vadd.f32 %v322_v59, %v319_v60  ;;  %v325_v9 = vadd.f32 %v323_v62, %v320_v61  ;;  %v331_v10 = vstv %s1361_s16  ;;  %v337_v14 = vmul.f32 %v336_v11, %v1315_v0 }
  0x37   :  { %v338_v15 = vmul.f32 %v336_v11, %v1317_v1  ;;  %v339_v16 = vstv %s1356_s3  ;;  %v344_v17 = vstv %s1366_s17  ;;  %s1407_s22 = sld [smem:[#allocation2 + $0x280]]  ;;  %v349_v26 = vstv %s1369_s18 }
  0x38   :  { %v329_v18 = vadd.f32 %v327_v5, %v324_v8  ;;  %v330_v19 = vadd.f32 %v328_v6, %v325_v9  ;;  %v340_v20 = vmul.f32 %v339_v16, %v1319_v2  ;;  %v341_v21 = vmul.f32 %v339_v16, %v1324_v7  ;;  %s1411_s23 = sld [smem:[#allocation6 + $0x4]] }
  0x39   :  { %v345_v24 = vmul.f32 %v344_v17, %v1332_v12  ;;  %v346_v25 = vmul.f32 %v344_v17, %v1334_v13  ;;  %v354_v27 = vstv %s1374_s19  ;;  %s1417_s24 = sld [smem:[#allocation2 + $0x281]]  ;;  %v350_v32 = vmul.f32 %v349_v26, %v1346_v22 }
  0x3a   :  { %v332_v28 = vadd.f32 %v331_v10, %v329_v18  ;;  %v333_v29 = vadd.f32 %v331_v10, %v330_v19  ;;  %v342_v30 = vadd.f32 %v340_v20, %v337_v14  ;;  %v343_v31 = vadd.f32 %v341_v21, %v338_v15  ;;  %s1419_s25 = sld [smem:[#allocation2 + $0x282]] }
  0x3b   :  { %v351_v33 = vmul.f32 %v349_v26, %v1348_v23  ;;  %v359_v34 = vstv %s1377_s20  ;;  %v362_v35 = vstv %s1384_s0  ;;  %s1425_s5 = sld [smem:[#allocation2 + $0x283]]  ;;  %v367_v46 = vstv %s1391_s21 }
  0x3c   :  { %v1427_v36 = vmax.f32 %v332_v28, 0.0  ;;  %v1429_v37 = vmax.f32 %v333_v29, 0.0  ;;  %v347_v38 = vadd.f32 %v345_v24, %v342_v30  ;;  %v348_v39 = vadd.f32 %v346_v25, %v343_v31  ;;  %s1431_s6 = sld [smem:[#allocation6 + $0x5]] }
  0x3d   :  { %v360_v40 = vmul.f32 %v359_v34, %v1315_v0  ;;  %v361_v41 = vmul.f32 %v359_v34, %v1317_v1  ;;  %v363_v42 = vmul.f32 %v362_v35, %v1319_v2  ;;  %v364_v43 = vmul.f32 %v362_v35, %v1324_v7  ;;  %s1437_s27 = sld [smem:[#allocation2 + $0x300]] }
  0x3e   :  { %v352_v44 = vadd.f32 %v350_v32, %v347_v38  ;;  %v353_v45 = vadd.f32 %v351_v33, %v348_v39  ;;  %v372_v47 = vstv %s1399_s2  ;;  %s1441_s28 = sld [smem:[#allocation2 + $0x301]]  ;;  %v368_v50 = vmul.f32 %v367_v46, %v1332_v12 }
  0x3f   :  { %v365_v48 = vadd.f32 %v363_v42, %v360_v40  ;;  %v366_v49 = vadd.f32 %v364_v43, %v361_v41  ;;  %v369_v51 = vmul.f32 %v367_v46, %v1334_v13  ;;  %s1445_s29 = sld [smem:[#allocation2 + $0x302]]  ;;  %v373_v55 = vmul.f32 %v372_v47, %v1346_v22 }
  0x40   :  { %v355_v53 = vadd.f32 %v354_v27, %v352_v44  ;;  %v356_v54 = vadd.f32 %v354_v27, %v353_v45  ;;  %v374_v57 = vmul.f32 %v372_v47, %v1348_v23  ;;  %s1449_s30 = sld [smem:[#allocation2 + $0x303]]  ;;  %v377_v60 = vstv %s1411_s23 }
  0x41   :  { %v370_v58 = vadd.f32 %v368_v50, %v365_v48  ;;  %v371_v59 = vadd.f32 %v369_v51, %v366_v49  ;;  %v382_v61 = vstv %s1407_s22  ;;  %s1459_s8 = sld [smem:[#allocation2 + $0x380]]  ;;  %v385_v10 = vstv %s1417_s24 }
  0x42   :  { %v1453_v62 = vmax.f32 %v355_v53, 0.0  ;;  %v1455_v63 = vmax.f32 %v356_v54, 0.0  ;;  %v383_v5 = vmul.f32 %v382_v61, %v1315_v0  ;;  %v384_v6 = vmul.f32 %v382_v61, %v1317_v1  ;;  %s1463_s9 = sld [smem:[#allocation6 + $0x6]] }
  0x43   :  { %v375_v8 = vadd.f32 %v373_v55, %v370_v58  ;;  %v376_v9 = vadd.f32 %v374_v57, %v371_v59  ;;  %v390_v11 = vstv %s1419_s25  ;;  %v386_v14 = vmul.f32 %v385_v10, %v1319_v2  ;;  %s1469_s10 = sld [smem:[#allocation2 + $0x381]] }
  0x44   :  { %v387_v15 = vmul.f32 %v385_v10, %v1324_v7  ;;  %v391_v16 = vmul.f32 %v390_v11, %v1332_v12  ;;  %v392_v17 = vmul.f32 %v390_v11, %v1334_v13  ;;  %v395_v20 = vstv %s1425_s5  ;;  %s1473_s11 = sld [smem:[#allocation2 + $0x382]] }
  0x45   :  { %v378_v18 = vadd.f32 %v377_v60, %v375_v8  ;;  %v379_v19 = vadd.f32 %v377_v60, %v376_v9  ;;  %v400_v21 = vstv %s1431_s6  ;;  %v388_v24 = vadd.f32 %v386_v14, %v383_v5  ;;  %s1477_s12 = sld [smem:[#allocation2 + $0x383]] }
  0x46   :  { %v389_v25 = vadd.f32 %v387_v15, %v384_v6  ;;  %v396_v26 = vmul.f32 %v395_v20, %v1346_v22  ;;  %v397_v27 = vmul.f32 %v395_v20, %v1348_v23  ;;  %v405_v30 = vstv %s1437_s27  ;;  %s1485_s13 = sld [smem:[#allocation6 + $0x7]] }
  0x47   :  { %v1479_v28 = vmax.f32 %v378_v18, 0.0  ;;  %v1481_v29 = vmax.f32 %v379_v19, 0.0  ;;  %v408_v31 = vstv %s1441_s28  ;;  %v393_v32 = vadd.f32 %v391_v16, %v388_v24  ;;  %s1489_s1 = sld [smem:[#allocation8]] }
  0x48   :  { %v394_v33 = vadd.f32 %v392_v17, %v389_v25  ;;  %v406_v34 = vmul.f32 %v405_v30, %v1315_v0  ;;  %v407_v35 = vmul.f32 %v405_v30, %v1317_v1  ;;  %v409_v38 = vmul.f32 %v408_v31, %v1319_v2  ;;  %s1495_s14 = sld [smem:[#allocation8 + $0x1]] }
  0x49   :  { %v410_v39 = vmul.f32 %v408_v31, %v1324_v7  ;;  %v413_v40 = vstv %s1445_s29  ;;  %v418_v41 = vstv %s1449_s30  ;;  %v398_v42 = vadd.f32 %v396_v26, %v393_v32  ;;  %s1501_s15 = sld [smem:[#allocation8 + $0x2]] }
  0x4a   :  { %v399_v43 = vadd.f32 %v397_v27, %v394_v33  ;;  %v414_v44 = vmul.f32 %v413_v40, %v1332_v12  ;;  %v415_v45 = vmul.f32 %v413_v40, %v1334_v13  ;;  %v411_v46 = vadd.f32 %v409_v38, %v406_v34  ;;  %s1505_s3 = sld [smem:[#allocation8 + $0x3]] }
  0x4b   :  { %v412_v47 = vadd.f32 %v410_v39, %v407_v35  ;;  %v419_v48 = vmul.f32 %v418_v41, %v1346_v22  ;;  %v420_v49 = vmul.f32 %v418_v41, %v1348_v23  ;;  %v401_v50 = vadd.f32 %v400_v21, %v398_v42  ;;  %s1509_s16 = sld [smem:[#allocation8 + $0x4]] }
  0x4c   :  { %v402_v51 = vadd.f32 %v400_v21, %v399_v43  ;;  %v423_v53 = vstv %s1463_s9  ;;  %v428_v54 = vstv %s1459_s8  ;;  %v416_v55 = vadd.f32 %v414_v44, %v411_v46  ;;  %s1517_s17 = sld [smem:[#allocation8 + $0x5]] }
  0x4d   :  { %v417_v57 = vadd.f32 %v415_v45, %v412_v47  ;;  %v429_v58 = vmul.f32 %v428_v54, %v1315_v0  ;;  %v430_v59 = vmul.f32 %v428_v54, %v1317_v1  ;;  %v1511_v60 = vmax.f32 %v401_v50, 0.0  ;;  %s1521_s18 = sld [smem:[#allocation8 + $0x6]] }
  0x4e   :  { %v1513_v61 = vmax.f32 %v402_v51, 0.0  ;;  %v431_v5 = vstv %s1469_s10  ;;  %v436_v6 = vstv %s1473_s11  ;;  %v421_v8 = vadd.f32 %v419_v48, %v416_v55  ;;  %s1527_s19 = sld [smem:[#allocation8 + $0x7]] }
  0x4f   :  { %v422_v9 = vadd.f32 %v420_v49, %v417_v57  ;;  %v432_v10 = vmul.f32 %v431_v5, %v1319_v2  ;;  %v433_v0 = vmul.f32 %v431_v5, %v1324_v7  ;;  %v437_v1 = vmul.f32 %v436_v6, %v1332_v12  ;;  %s1529_s20 = sld [smem:[#allocation8 + $0x80]] }
  0x50   :  { %v438_v11 = vmul.f32 %v436_v6, %v1334_v13  ;;  %v441_v14 = vstv %s1477_s12  ;;  %v446_v15 = vstv %s1485_s13  ;;  %v424_v16 = vadd.f32 %v423_v53, %v421_v8  ;;  %s1535_s0 = sld [smem:[#allocation9]] }
  0x51   :  { %v425_v17 = vadd.f32 %v423_v53, %v422_v9  ;;  %v434_v18 = vadd.f32 %v432_v10, %v429_v58  ;;  %v435_v19 = vadd.f32 %v433_v0, %v430_v59  ;;  %v442_v2 = vmul.f32 %v441_v14, %v1346_v22  ;;  %s1545_s21 = sld [smem:[#allocation8 + $0x81]] }
  0x52   :  { %v443_v7 = vmul.f32 %v441_v14, %v1348_v23  ;;  %v451_v20 = vstv %s1489_s1  ;;  %v454_v12 = vstv %s1495_s14  ;;  %v1537_v13 = vmax.f32 %v424_v16, 0.0  ;;  %s1549_s2 = sld [smem:[#allocation8 + $0x82]] }
  0x53   :  { %v1539_v21 = vmax.f32 %v425_v17, 0.0  ;;  %v439_v24 = vadd.f32 %v437_v1, %v434_v18  ;;  %v440_v25 = vadd.f32 %v438_v11, %v435_v19  ;;  %v452_v26 = vmul.f32 %v451_v20, %v1379_v52  ;;  %s1553_s22 = sld [smem:[#allocation8 + $0x83]] }
  0x54   :  { %v453_v27 = vmul.f32 %v451_v20, %v1386_v56  ;;  %v455_v22 = vmul.f32 %v454_v12, %v1393_v3  ;;  %v456_v30 = vmul.f32 %v454_v12, %v1395_v4  ;;  %v459_v32 = vstv %s1501_s15  ;;  %s1557_s23 = sld [smem:[#allocation8 + $0x84]] }
  0x55   :  { %v444_v23 = vadd.f32 %v442_v2, %v439_v24  ;;  %v445_v31 = vadd.f32 %v443_v7, %v440_v25  ;;  %v464_v33 = vstv %s1505_s3  ;;  %v460_v38 = vmul.f32 %v459_v32, %v1427_v36  ;;  %s1561_s24 = sld [smem:[#allocation8 + $0x85]] }
  0x56   :  { %v457_v34 = vadd.f32 %v455_v22, %v452_v26  ;;  %v458_v35 = vadd.f32 %v456_v30, %v453_v27  ;;  %v461_v39 = vmul.f32 %v459_v32, %v1429_v37  ;;  %v465_v42 = vmul.f32 %v464_v33, %v1453_v62  ;;  %s1569_s25 = sld [smem:[#allocation8 + $0x86]] }
  0x57   :  { %v447_v40 = vadd.f32 %v446_v15, %v444_v23  ;;  %v448_v41 = vadd.f32 %v446_v15, %v445_v31  ;;  %v466_v43 = vmul.f32 %v464_v33, %v1455_v63  ;;  %v469_v46 = vstv %s1509_s16  ;;  %s1573_s5 = sld [smem:[#allocation8 + $0x87]] }
  0x58   :  { %v462_v44 = vadd.f32 %v460_v38, %v457_v34  ;;  %v463_v45 = vadd.f32 %v461_v39, %v458_v35  ;;  %v474_v47 = vstv %s1517_s17  ;;  %v470_v50 = vmul.f32 %v469_v46, %v1479_v28  ;;  %s1579_s6 = sld [smem:[#allocation8 + $0x100]] }
  0x59   :  { %v1563_v48 = vmax.f32 %v447_v40, 0.0  ;;  %v1565_v49 = vmax.f32 %v448_v41, 0.0  ;;  %v471_v51 = vmul.f32 %v469_v46, %v1481_v29  ;;  %v475_v55 = vmul.f32 %v474_v47, %v1511_v60  ;;  %s1583_s27 = sld [smem:[#allocation8 + $0x101]] }
  0x5a   :  { %v467_v53 = vadd.f32 %v465_v42, %v462_v44  ;;  %v468_v54 = vadd.f32 %v466_v43, %v463_v45  ;;  %v476_v57 = vmul.f32 %v474_v47, %v1513_v61  ;;  %v479_v58 = vstv %s1521_s18  ;;  %s1589_s28 = sld [smem:[#allocation9 + $0x1]] }
  0x5b   :  { %v484_v59 = vstv %s1527_s19  ;;  %v489_v5 = vstv %s1535_s0  ;;  %v494_v6 = vstv %s1529_s20  ;;  %v480_v10 = vmul.f32 %v479_v58, %v1537_v13  ;;  %s1593_s29 = sld [smem:[#allocation8 + $0x102]] }
  0x5c   :  { %v472_v8 = vadd.f32 %v470_v50, %v467_v53  ;;  %v473_v9 = vadd.f32 %v471_v51, %v468_v54  ;;  %v481_v0 = vmul.f32 %v479_v58, %v1539_v21  ;;  %v485_v1 = vmul.f32 %v484_v59, %v1563_v48  ;;  %s1599_s30 = sld [smem:[#allocation8 + $0x103]] }
  0x5d   :  { %v486_v11 = vmul.f32 %v484_v59, %v1565_v49  ;;  %v495_v14 = vmul.f32 %v494_v6, %v1379_v52  ;;  %v496_v15 = vmul.f32 %v494_v6, %v1386_v56  ;;  %v497_v18 = vstv %s1545_s21  ;;  %s1607_s8 = sld [smem:[#allocation8 + $0x104]] }
  0x5e   :  { %v477_v16 = vadd.f32 %v475_v55, %v472_v8  ;;  %v478_v17 = vadd.f32 %v476_v57, %v473_v9  ;;  %v502_v19 = vstv %s1549_s2  ;;  %v498_v2 = vmul.f32 %v497_v18, %v1393_v3  ;;  %s1611_s9 = sld [smem:[#allocation8 + $0x105]] }
  0x5f   :  { %v499_v7 = vmul.f32 %v497_v18, %v1395_v4  ;;  %v503_v20 = vmul.f32 %v502_v19, %v1427_v36  ;;  %v504_v12 = vmul.f32 %v502_v19, %v1429_v37  ;;  %v507_v26 = vstv %s1553_s22  ;;  %s1617_s10 = sld [smem:[#allocation8 + $0x106]] }
  0x60   :  { %v482_v24 = vadd.f32 %v480_v10, %v477_v16  ;;  %v483_v25 = vadd.f32 %v481_v0, %v478_v17  ;;  %v512_v27 = vstv %s1557_s23  ;;  %v500_v22 = vadd.f32 %v498_v2, %v495_v14  ;;  %s1625_s11 = sld [smem:[#allocation8 + $0x107]] }
  0x61   :  { %v501_v30 = vadd.f32 %v499_v7, %v496_v15  ;;  %v508_v23 = vmul.f32 %v507_v26, %v1453_v62  ;;  %v509_v31 = vmul.f32 %v507_v26, %v1455_v63  ;;  %v513_v34 = vmul.f32 %v512_v27, %v1479_v28  ;;  %s1629_s12 = sld [smem:[#allocation8 + $0x180]] }
  0x62   :  { %v487_v32 = vadd.f32 %v485_v1, %v482_v24  ;;  %v488_v33 = vadd.f32 %v486_v11, %v483_v25  ;;  %v514_v35 = vmul.f32 %v512_v27, %v1481_v29  ;;  %v505_v38 = vadd.f32 %v503_v20, %v500_v22  ;;  %s1635_s13 = sld [smem:[#allocation8 + $0x181]] }
  0x63   :  { %v506_v39 = vadd.f32 %v504_v12, %v501_v30  ;;  %v517_v40 = vstv %s1561_s24  ;;  %v522_v41 = vstv %s1569_s25  ;;  %v527_v55 = vstv %s1573_s5  ;;  %s1639_s1 = sld [smem:[#allocation9 + $0x2]] }
  0x64   :  { %v490_v42 = vadd.f32 %v489_v5, %v487_v32  ;;  %v491_v43 = vadd.f32 %v489_v5, %v488_v33  ;;  %v518_v44 = vmul.f32 %v517_v40, %v1511_v60  ;;  %v519_v45 = vmul.f32 %v517_v40, %v1513_v61  ;;  %s1645_s14 = sld [smem:[#allocation8 + $0x182]] }
  0x65   :  { %v510_v46 = vadd.f32 %v508_v23, %v505_v38  ;;  %v511_v47 = vadd.f32 %v509_v31, %v506_v39  ;;  %v523_v50 = vmul.f32 %v522_v41, %v1537_v13  ;;  %v524_v51 = vmul.f32 %v522_v41, %v1539_v21  ;;  %s1649_s15 = sld [smem:[#allocation8 + $0x183]] }
  0x66   :  { %v1619_v53 = vmax.f32 %v490_v42, 0.0  ;;  %v1621_v54 = vmax.f32 %v491_v43, 0.0  ;;  %v532_v57 = vstv %s1589_s28  ;;  %v528_v5 = vmul.f32 %v527_v55, %v1563_v48  ;;  %s1653_s3 = sld [smem:[#allocation8 + $0x184]] }
  0x67   :  { %v515_v58 = vadd.f32 %v513_v34, %v510_v46  ;;  %v516_v59 = vadd.f32 %v514_v35, %v511_v47  ;;  %v529_v6 = vmul.f32 %v527_v55, %v1565_v49  ;;  %v537_v8 = vstv %s1579_s6  ;;  %s1657_s16 = sld [smem:[#allocation8 + $0x185]] }
  0x68   :  { %v540_v9 = vstv %s1583_s27  ;;  %v545_v10 = vstv %s1593_s29  ;;  %v550_v0 = vstv %s1599_s30  ;;  %v538_v14 = vmul.f32 %v537_v8, %v1379_v52  ;;  %s1661_s17 = sld [smem:[#allocation8 + $0x186]] }
  0x69   :  { %v520_v1 = vadd.f32 %v518_v44, %v515_v58  ;;  %v521_v11 = vadd.f32 %v519_v45, %v516_v59  ;;  %v539_v15 = vmul.f32 %v537_v8, %v1386_v56  ;;  %v541_v16 = vmul.f32 %v540_v9, %v1393_v3  ;;  %s1665_s18 = sld [smem:[#allocation8 + $0x187]] }
  0x6a   :  { %v542_v17 = vmul.f32 %v540_v9, %v1395_v4  ;;  %v546_v18 = vmul.f32 %v545_v10, %v1427_v36  ;;  %v547_v19 = vmul.f32 %v545_v10, %v1429_v37  ;;  %v551_v20 = vmul.f32 %v550_v0, %v1453_v62  ;;  %s1669_s19 = sld [smem:[#allocation9 + $0x3]] }
  0x6b   :  { %v525_v2 = vadd.f32 %v523_v50, %v520_v1  ;;  %v526_v7 = vadd.f32 %v524_v51, %v521_v11  ;;  %v552_v12 = vmul.f32 %v550_v0, %v1455_v63  ;;  %v543_v24 = vadd.f32 %v541_v16, %v538_v14  ;;  %s1683_s20 = sld [smem:[#allocation8 + $0x200]] }
  0x6c   :  { %v544_v25 = vadd.f32 %v542_v17, %v539_v15  ;;  %v555_v26 = vstv %s1607_s8  ;;  %v560_v27 = vstv %s1611_s9  ;;  %v565_v40 = vstv %s1617_s10  ;;  %s1687_s0 = sld [smem:[#allocation8 + $0x201]] }
  0x6d   :  { %v530_v22 = vadd.f32 %v528_v5, %v525_v2  ;;  %v531_v30 = vadd.f32 %v529_v6, %v526_v7  ;;  %v556_v23 = vmul.f32 %v555_v26, %v1479_v28  ;;  %v557_v31 = vmul.f32 %v555_v26, %v1481_v29  ;;  %s1693_s21 = sld [smem:[#allocation8 + $0x202]] }
  0x6e   :  { %v548_v32 = vadd.f32 %v546_v18, %v543_v24  ;;  %v549_v33 = vadd.f32 %v547_v19, %v544_v25  ;;  %v561_v34 = vmul.f32 %v560_v27, %v1511_v60  ;;  %v562_v35 = vmul.f32 %v560_v27, %v1513_v61  ;;  %s1695_s2 = sld [smem:[#allocation8 + $0x203]] }
  0x6f   :  { %v533_v38 = vadd.f32 %v532_v57, %v530_v22  ;;  %v534_v39 = vadd.f32 %v532_v57, %v531_v30  ;;  %v570_v41 = vstv %s1625_s11  ;;  %v566_v44 = vmul.f32 %v565_v40, %v1537_v13  ;;  %s1701_s22 = sld [smem:[#allocation8 + $0x204]] }
  0x70   :  { %v553_v42 = vadd.f32 %v551_v20, %v548_v32  ;;  %v554_v43 = vadd.f32 %v552_v12, %v549_v33  ;;  %v567_v45 = vmul.f32 %v565_v40, %v1539_v21  ;;  %v571_v50 = vmul.f32 %v570_v41, %v1563_v48  ;;  %s1707_s23 = sld [smem:[#allocation8 + $0x205]] }
  0x71   :  { %v1671_v46 = vmax.f32 %v533_v38, 0.0  ;;  %v1673_v47 = vmax.f32 %v534_v39, 0.0  ;;  %v572_v51 = vmul.f32 %v570_v41, %v1565_v49  ;;  %v575_v58 = vstv %s1639_s1  ;;  %s1709_s24 = sld [smem:[#allocation8 + $0x206]] }
  0x72   :  { %v558_v55 = vadd.f32 %v556_v23, %v553_v42  ;;  %v559_v57 = vadd.f32 %v557_v31, %v554_v43  ;;  %v580_v59 = vstv %s1629_s12  ;;  %v583_v8 = vstv %s1635_s13  ;;  %s1715_s25 = sld [smem:[#allocation8 + $0x207]] }
  0x73   :  { %v581_v5 = vmul.f32 %v580_v59, %v1379_v52  ;;  %v582_v6 = vmul.f32 %v580_v59, %v1386_v56  ;;  %v588_v9 = vstv %s1645_s14  ;;  %v584_v1 = vmul.f32 %v583_v8, %v1393_v3  ;;  %s1721_s5 = sld [smem:[#allocation8 + $0x280]] }
  0x74   :  { %v563_v10 = vadd.f32 %v561_v34, %v558_v55  ;;  %v564_v0 = vadd.f32 %v562_v35, %v559_v57  ;;  %v585_v11 = vmul.f32 %v583_v8, %v1395_v4  ;;  %v589_v14 = vmul.f32 %v588_v9, %v1427_v36  ;;  %s1727_s6 = sld [smem:[#allocation8 + $0x281]] }
  0x75   :  { %v590_v15 = vmul.f32 %v588_v9, %v1429_v37  ;;  %v593_v16 = vstv %s1649_s15  ;;  %v598_v17 = vstv %s1653_s3  ;;  %v586_v2 = vadd.f32 %v584_v1, %v581_v5  ;;  %s1731_s27 = sld [smem:[#allocation8 + $0x282]] }
  0x76   :  { %v568_v18 = vadd.f32 %v566_v44, %v563_v10  ;;  %v569_v19 = vadd.f32 %v567_v45, %v564_v0  ;;  %v587_v7 = vadd.f32 %v585_v11, %v582_v6  ;;  %v594_v20 = vmul.f32 %v593_v16, %v1453_v62  ;;  %s1737_s28 = sld [smem:[#allocation9 + $0x4]] }
  0x77   :  { %v595_v12 = vmul.f32 %v593_v16, %v1455_v63  ;;  %v599_v24 = vmul.f32 %v598_v17, %v1479_v28  ;;  %v600_v25 = vmul.f32 %v598_v17, %v1481_v29  ;;  %v591_v22 = vadd.f32 %v589_v14, %v586_v2  ;;  %s1743_s29 = sld [smem:[#allocation8 + $0x283]] }
  0x78   :  { %v573_v26 = vadd.f32 %v571_v50, %v568_v18  ;;  %v574_v27 = vadd.f32 %v572_v51, %v569_v19  ;;  %v592_v30 = vadd.f32 %v590_v15, %v587_v7  ;;  %v603_v23 = vstv %s1657_s16  ;;  %s1747_s30 = sld [smem:[#allocation8 + $0x284]] }
  0x79   :  { %v608_v31 = vstv %s1661_s17  ;;  %v613_v32 = vstv %s1665_s18  ;;  %v618_v33 = vstv %s1669_s19  ;;  %v596_v38 = vadd.f32 %v594_v20, %v591_v22  ;;  %s1751_s8 = sld [smem:[#allocation8 + $0x285]] }
  0x7a   :  { %v576_v34 = vadd.f32 %v575_v58, %v573_v26  ;;  %v577_v35 = vadd.f32 %v575_v58, %v574_v27  ;;  %v597_v39 = vadd.f32 %v595_v12, %v592_v30  ;;  %v604_v40 = vmul.f32 %v603_v23, %v1511_v60  ;;  %s1755_s9 = sld [smem:[#allocation8 + $0x286]] }
  0x7b   :  { %v605_v41 = vmul.f32 %v603_v23, %v1513_v61  ;;  %v609_v42 = vmul.f32 %v608_v31, %v1537_v13  ;;  %v610_v43 = vmul.f32 %v608_v31, %v1539_v21  ;;  %v601_v50 = vadd.f32 %v599_v24, %v596_v38  ;;  %s1759_s10 = sld [smem:[#allocation8 + $0x287]] }
  0x7c   :  { %v1717_v44 = vmax.f32 %v576_v34, 0.0  ;;  %v1719_v45 = vmax.f32 %v577_v35, 0.0  ;;  %v602_v51 = vadd.f32 %v600_v25, %v597_v39  ;;  %v614_v55 = vmul.f32 %v613_v32, %v1563_v48  ;;  %s1767_s11 = sld [smem:[#allocation8 + $0x300]] }
  0x7d   :  { %v615_v57 = vmul.f32 %v613_v32, %v1565_v49  ;;  %v623_v58 = vstv %s1683_s20  ;;  %v626_v59 = vstv %s1687_s0  ;;  %v606_v5 = vadd.f32 %v604_v40, %v601_v50  ;;  %s1771_s12 = sld [smem:[#allocation8 + $0x301]] }
  0x7e   :  { %v607_v6 = vadd.f32 %v605_v41, %v602_v51  ;;  %v624_v8 = vmul.f32 %v623_v58, %v1379_v52  ;;  %v625_v9 = vmul.f32 %v623_v58, %v1386_v56  ;;  %v627_v10 = vmul.f32 %v626_v59, %v1393_v3  ;;  %s1777_s13 = sld [smem:[#allocation9 + $0x5]] }
  0x7f   :  { %v628_v0 = vmul.f32 %v626_v59, %v1395_v4  ;;  %v631_v1 = vstv %s1693_s21  ;;  %v636_v11 = vstv %s1695_s2  ;;  %v611_v14 = vadd.f32 %v609_v42, %v606_v5  ;;  %s1781_s1 = sld [smem:[#allocation8 + $0x302]] }
  0x80   :  { %v612_v15 = vadd.f32 %v610_v43, %v607_v6  ;;  %v632_v16 = vmul.f32 %v631_v1, %v1427_v36  ;;  %v633_v17 = vmul.f32 %v631_v1, %v1429_v37  ;;  %v629_v18 = vadd.f32 %v627_v10, %v624_v8  ;;  %s1787_s14 = sld [smem:[#allocation8 + $0x303]] }
  0x81   :  { %v630_v19 = vadd.f32 %v628_v0, %v625_v9  ;;  %v637_v2 = vmul.f32 %v636_v11, %v1453_v62  ;;  %v638_v7 = vmul.f32 %v636_v11, %v1455_v63  ;;  %v616_v20 = vadd.f32 %v614_v55, %v611_v14  ;;  %s1795_s15 = sld [smem:[#allocation8 + $0x304]] }
  0x82   :  { %v617_v12 = vadd.f32 %v615_v57, %v612_v15  ;;  %v641_v24 = vstv %s1701_s22  ;;  %v646_v25 = vstv %s1707_s23  ;;  %v634_v26 = vadd.f32 %v632_v16, %v629_v18  ;;  %s1799_s3 = sld [smem:[#allocation8 + $0x305]] }
  0x83   :  { %v635_v27 = vadd.f32 %v633_v17, %v630_v19  ;;  %v642_v22 = vmul.f32 %v641_v24, %v1479_v28  ;;  %v643_v30 = vmul.f32 %v641_v24, %v1481_v29  ;;  %v619_v23 = vadd.f32 %v618_v33, %v616_v20  ;;  %s1805_s16 = sld [smem:[#allocation8 + $0x306]] }
  0x84   :  { %v620_v31 = vadd.f32 %v618_v33, %v617_v12  ;;  %v647_v32 = vmul.f32 %v646_v25, %v1511_v60  ;;  %v648_v34 = vmul.f32 %v646_v25, %v1513_v61  ;;  %v639_v35 = vadd.f32 %v637_v2, %v634_v26  ;;  %s1813_s17 = sld [smem:[#allocation8 + $0x307]] }
  0x85   :  { %v640_v38 = vadd.f32 %v638_v7, %v635_v27  ;;  %v651_v39 = vstv %s1709_s24  ;;  %v656_v40 = vstv %s1715_s25  ;;  %v1761_v41 = vmax.f32 %v619_v23, 0.0  ;;  %s1817_s18 = sld [smem:[#allocation8 + $0x380]] }
  0x86   :  { %v1763_v42 = vmax.f32 %v620_v31, 0.0  ;;  %v652_v33 = vmul.f32 %v651_v39, %v1537_v13  ;;  %v653_v43 = vmul.f32 %v651_v39, %v1539_v21  ;;  %v644_v50 = vadd.f32 %v642_v22, %v639_v35  ;;  %s1823_s19 = sld [smem:[#allocation8 + $0x381]] }
  0x87   :  { %v645_v51 = vadd.f32 %v643_v30, %v640_v38  ;;  %v657_v55 = vmul.f32 %v656_v40, %v1563_v48  ;;  %v658_v57 = vmul.f32 %v656_v40, %v1565_v49  ;;  %v661_v58 = vstv %s1737_s28  ;;  %s1827_s20 = sld [smem:[#allocation9 + $0x6]] }
  0x88   :  { %v666_v59 = vstv %s1721_s5  ;;  %v669_v5 = vstv %s1727_s6  ;;  %v674_v6 = vstv %s1731_s27  ;;  %v649_v8 = vadd.f32 %v647_v32, %v644_v50  ;;  %s1833_s0 = sld [smem:[#allocation8 + $0x382]] }
  0x89   :  { %v650_v9 = vadd.f32 %v648_v34, %v645_v51  ;;  %v667_v10 = vmul.f32 %v666_v59, %v1379_v52  ;;  %v668_v0 = vmul.f32 %v666_v59, %v1386_v56  ;;  %v670_v1 = vmul.f32 %v669_v5, %v1393_v3  ;;  %s1837_s21 = sld [smem:[#allocation8 + $0x383]] }
  0x8a   :  { %v671_v11 = vmul.f32 %v669_v5, %v1395_v4  ;;  %v675_v14 = vmul.f32 %v674_v6, %v1427_v36  ;;  %v676_v15 = vmul.f32 %v674_v6, %v1429_v37  ;;  %v654_v16 = vadd.f32 %v652_v33, %v649_v8  ;;  %s1841_s2 = sld [smem:[#allocation8 + $0x384]] }
  0x8b   :  { %v655_v17 = vadd.f32 %v653_v43, %v650_v9  ;;  %v679_v18 = vstv %s1743_s29  ;;  %v684_v19 = vstv %s1747_s30  ;;  %v672_v2 = vadd.f32 %v670_v1, %v667_v10  ;;  %s1845_s22 = sld [smem:[#allocation8 + $0x385]] }
  0x8c   :  { %v673_v7 = vadd.f32 %v671_v11, %v668_v0  ;;  %v680_v20 = vmul.f32 %v679_v18, %v1453_v62  ;;  %v681_v12 = vmul.f32 %v679_v18, %v1455_v63  ;;  %v659_v24 = vadd.f32 %v657_v55, %v654_v16  ;;  %s1849_s23 = sld [smem:[#allocation8 + $0x386]] }
  0x8d   :  { %v660_v25 = vadd.f32 %v658_v57, %v655_v17  ;;  %v685_v26 = vmul.f32 %v684_v19, %v1479_v28  ;;  %v686_v27 = vmul.f32 %v684_v19, %v1481_v29  ;;  %v677_v22 = vadd.f32 %v675_v14, %v672_v2  ;;  %s1853_s24 = sld [smem:[#allocation8 + $0x387]] }
  0x8e   :  { %v678_v30 = vadd.f32 %v676_v15, %v673_v7  ;;  %v689_v23 = vstv %s1751_s8  ;;  %v694_v31 = vstv %s1755_s9  ;;  %v662_v32 = vadd.f32 %v661_v58, %v659_v24  ;;  %s1857_s25 = sld [smem:[#allocation9 + $0x7]] }
  0x8f   :  { %v663_v34 = vadd.f32 %v661_v58, %v660_v25  ;;  %v690_v35 = vmul.f32 %v689_v23, %v1511_v60  ;;  %v691_v38 = vmul.f32 %v689_v23, %v1513_v61  ;;  %v682_v39 = vadd.f32 %v680_v20, %v677_v22  ;;  %s1871_s5 = sld [smem:[#allocation11]] }
  0x90   :  { %v683_v40 = vadd.f32 %v681_v12, %v678_v30  ;;  %v695_v33 = vmul.f32 %v694_v31, %v1537_v13  ;;  %v696_v43 = vmul.f32 %v694_v31, %v1539_v21  ;;  %v1807_v50 = vmax.f32 %v662_v32, 0.0  ;;  %s1875_s6 = sld [smem:[#allocation11 + $0x1]] }
  0x91   :  { %v1809_v51 = vmax.f32 %v663_v34, 0.0  ;;  %v699_v55 = vstv %s1759_s10  ;;  %v704_v57 = vstv %s1777_s13  ;;  %v687_v58 = vadd.f32 %v685_v26, %v682_v39  ;;  %s1881_s27 = sld [smem:[#allocation11 + $0x2]] }
  0x92   :  { %v688_v59 = vadd.f32 %v686_v27, %v683_v40  ;;  %v700_v5 = vmul.f32 %v699_v55, %v1563_v48  ;;  %v701_v6 = vmul.f32 %v699_v55, %v1565_v49  ;;  %v709_v8 = vstv %s1767_s11  ;;  %s1883_s28 = sld [smem:[#allocation11 + $0x3]] }
  0x93   :  { %v712_v9 = vstv %s1771_s12  ;;  %v717_v10 = vstv %s1781_s1  ;;  %v722_v0 = vstv %s1787_s14  ;;  %v692_v1 = vadd.f32 %v690_v35, %v687_v58  ;;  %s1889_s29 = sld [smem:[#allocation11 + $0x4]] }
  0x94   :  { %v693_v11 = vadd.f32 %v691_v38, %v688_v59  ;;  %v710_v14 = vmul.f32 %v709_v8, %v1379_v52  ;;  %v711_v15 = vmul.f32 %v709_v8, %v1386_v56  ;;  %v713_v16 = vmul.f32 %v712_v9, %v1393_v3  ;;  %s1895_s30 = sld [smem:[#allocation11 + $0x5]] }
  0x95   :  { %v714_v17 = vmul.f32 %v712_v9, %v1395_v4  ;;  %v718_v18 = vmul.f32 %v717_v10, %v1427_v36  ;;  %v719_v19 = vmul.f32 %v717_v10, %v1429_v37  ;;  %v697_v2 = vadd.f32 %v695_v33, %v692_v1  ;;  %s1901_s8 = sld [smem:[#allocation11 + $0x6]] }
  0x96   :  { %v698_v7 = vadd.f32 %v696_v43, %v693_v11  ;;  %v723_v20 = vmul.f32 %v722_v0, %v1453_v62  ;;  %v724_v12 = vmul.f32 %v722_v0, %v1455_v63  ;;  %v715_v24 = vadd.f32 %v713_v16, %v710_v14  ;;  %s1907_s9 = sld [smem:[#allocation11 + $0x7]] }
  0x97   :  { %v716_v25 = vadd.f32 %v714_v17, %v711_v15  ;;  %v727_v26 = vstv %s1795_s15  ;;  %v732_v27 = vstv %s1799_s3  ;;  %v702_v22 = vadd.f32 %v700_v5, %v697_v2  ;;  %s1913_s10 = sld [smem:[#allocation11 + $0x80]] }
  0x98   :  { %v703_v30 = vadd.f32 %v701_v6, %v698_v7  ;;  %v728_v23 = vmul.f32 %v727_v26, %v1479_v28  ;;  %v729_v31 = vmul.f32 %v727_v26, %v1481_v29  ;;  %v720_v32 = vadd.f32 %v718_v18, %v715_v24  ;;  %s1917_s11 = sld [smem:[#allocation12]] }
  0x99   :  { %v721_v34 = vadd.f32 %v719_v19, %v716_v25  ;;  %v733_v35 = vmul.f32 %v732_v27, %v1511_v60  ;;  %v734_v38 = vmul.f32 %v732_v27, %v1513_v61  ;;  %v705_v39 = vadd.f32 %v704_v57, %v702_v22  ;;  %s1923_s12 = sld [smem:[#allocation11 + $0x81]] }
  0x9a   :  { %v706_v40 = vadd.f32 %v704_v57, %v703_v30  ;;  %v737_v33 = vstv %s1805_s16  ;;  %v742_v43 = vstv %s1813_s17  ;;  %v725_v55 = vadd.f32 %v723_v20, %v720_v32  ;;  %s1927_s13 = sld [smem:[#allocation11 + $0x82]] }
  0x9b   :  { %v726_v58 = vadd.f32 %v724_v12, %v721_v34  ;;  %v738_v59 = vmul.f32 %v737_v33, %v1537_v13  ;;  %v739_v5 = vmul.f32 %v737_v33, %v1539_v21  ;;  %v1859_v6 = vmax.f32 %v705_v39, 0.0  ;;  %s1931_s1 = sld [smem:[#allocation11 + $0x83]] }
  0x9c   :  { %v1861_v8 = vmax.f32 %v706_v40, 0.0  ;;  %v743_v57 = vmul.f32 %v742_v43, %v1563_v48  ;;  %v744_v9 = vmul.f32 %v742_v43, %v1565_v49  ;;  %v730_v10 = vadd.f32 %v728_v23, %v725_v55  ;;  %s1935_s14 = sld [smem:[#allocation11 + $0x84]] }
  0x9d   :  { %v731_v0 = vadd.f32 %v729_v31, %v726_v58  ;;  %v747_v1 = vstv %s1827_s20  ;;  %v752_v11 = vstv %s1817_s18  ;;  %v755_v16 = vstv %s1823_s19  ;;  %s1939_s15 = sld [smem:[#allocation11 + $0x85]] }
  0x9e   :  { %v753_v14 = vmul.f32 %v752_v11, %v1379_v52  ;;  %v754_v15 = vmul.f32 %v752_v11, %v1386_v56  ;;  %v760_v17 = vstv %s1833_s0  ;;  %v735_v18 = vadd.f32 %v733_v35, %v730_v10  ;;  %s1943_s3 = sld [smem:[#allocation11 + $0x86]] }
  0x9f   :  { %v736_v19 = vadd.f32 %v734_v38, %v731_v0  ;;  %v756_v2 = vmul.f32 %v755_v16, %v1393_v3  ;;  %v757_v7 = vmul.f32 %v755_v16, %v1395_v4  ;;  %v761_v20 = vmul.f32 %v760_v17, %v1427_v36  ;;  %s1947_s16 = sld [smem:[#allocation11 + $0x87]] }
  0xa0   :  { %v762_v12 = vmul.f32 %v760_v17, %v1429_v37  ;;  %v765_v24 = vstv %s1837_s21  ;;  %v770_v52 = vstv %s1841_s2  ;;  %v740_v56 = vadd.f32 %v738_v59, %v735_v18  ;;  %s1955_s17 = sld [smem:[#allocation11 + $0x100]] }
  0xa1   :  { %v741_v25 = vadd.f32 %v739_v5, %v736_v19  ;;  %v758_v26 = vadd.f32 %v756_v2, %v753_v14  ;;  %v759_v3 = vadd.f32 %v757_v7, %v754_v15  ;;  %v766_v4 = vmul.f32 %v765_v24, %v1453_v62  ;;  %s1959_s18 = sld [smem:[#allocation11 + $0x101]] }
  0xa2   :  { %v767_v36 = vmul.f32 %v765_v24, %v1455_v63  ;;  %v771_v37 = vmul.f32 %v770_v52, %v1479_v28  ;;  %v772_v27 = vmul.f32 %v770_v52, %v1481_v29  ;;  %v745_v22 = vadd.f32 %v743_v57, %v740_v56  ;;  %s1965_s19 = sld [smem:[#allocation12 + $0x1]] }
  0xa3   :  { %v746_v30 = vadd.f32 %v744_v9, %v741_v25  ;;  %v763_v23 = vadd.f32 %v761_v20, %v758_v26  ;;  %v764_v31 = vadd.f32 %v762_v12, %v759_v3  ;;  %v775_v32 = vstv %s1845_s22  ;;  %s1973_s20 = sld [smem:[#allocation11 + $0x102]] }
  0xa4   :  { %v780_v34 = vstv %s1849_s23  ;;  %v785_v35 = vstv %s1853_s24  ;;  %v790_v38 = vstv %s1857_s25  ;;  %v748_v39 = vadd.f32 %v747_v1, %v745_v22  ;;  %s1977_s0 = sld [smem:[#allocation11 + $0x103]]  ;;  %s1238_s25 = smov [#allocation15]  }
  0xa5   :  { %v749_v62 = vadd.f32 %v747_v1, %v746_v30  ;;  %v768_v63 = vadd.f32 %v766_v4, %v763_v23  ;;  %v769_v28 = vadd.f32 %v767_v36, %v764_v31  ;;  %v776_v29 = vmul.f32 %v775_v32, %v1511_v60  ;;  %s1983_s21 = sld [smem:[#allocation11 + $0x104]] }
  0xa6   :  { %v777_v40 = vmul.f32 %v775_v32, %v1513_v61  ;;  %v781_v33 = vmul.f32 %v780_v34, %v1537_v13  ;;  %v782_v43 = vmul.f32 %v780_v34, %v1539_v21  ;;  %v1903_v55 = vmax.f32 %v748_v39, 0.0  ;;  %s1987_s2 = sld [smem:[#allocation11 + $0x105]] }
  0xa7   :  { %v1905_v58 = vmax.f32 %v749_v62, 0.0  ;;  %v773_v59 = vadd.f32 %v771_v37, %v768_v63  ;;  %v774_v5 = vadd.f32 %v772_v27, %v769_v28  ;;  %v786_v60 = vmul.f32 %v785_v35, %v1563_v48  ;;  %s1993_s22 = sld [smem:[#allocation11 + $0x106]] }
  0xa8   :  { %v787_v61 = vmul.f32 %v785_v35, %v1565_v49  ;;  %v795_v57 = vstv %s1871_s5  ;;  %v798_v13 = vstv %s1875_s6  ;;  %v803_v48 = vstv %s1881_s27  ;;  %s1999_s23 = sld [smem:[#allocation11 + $0x107]]  ;;  %s930_s5 = sshll.u32 %s1238_s25, 4  ;;  %s931_s5 = int_to_ptr.vmem [resolvable:$true] %s930_s5 }
  0xa9   :  { %v778_v21 = vadd.f32 %v776_v29, %v773_v59  ;;  %v779_v9 = vadd.f32 %v777_v40, %v774_v5  ;;  %v796_v10 = vmul.f32 %v795_v57, %v1619_v53  ;;  %v797_v0 = vmul.f32 %v795_v57, %v1621_v54  ;;  %s2015_s24 = sld [smem:[#allocation12 + $0x2]] }
  0xaa   :  { %v799_v1 = vmul.f32 %v798_v13, %v1671_v46  ;;  %v800_v11 = vmul.f32 %v798_v13, %v1673_v47  ;;  %v808_v49 = vstv %s1883_s28  ;;  %v804_v16 = vmul.f32 %v803_v48, %v1717_v44  ;;  %s932_s28 = sshll.u32 %s2041_s7, 4  ;;  %s933_s28 = int_to_ptr.hbm [resolvable:$true] %s932_s28 }
  0xab   :  { %v783_v14 = vadd.f32 %v781_v33, %v778_v21  ;;  %v784_v15 = vadd.f32 %v782_v43, %v779_v9  ;;  %v805_v17 = vmul.f32 %v803_v48, %v1719_v45  ;;  %v809_v2 = vmul.f32 %v808_v49, %v1761_v41 }
  0xac   :  { %v801_v18 = vadd.f32 %v799_v1, %v796_v10  ;;  %v802_v19 = vadd.f32 %v800_v11, %v797_v0  ;;  %v810_v7 = vmul.f32 %v808_v49, %v1763_v42  ;;  %v813_v24 = vstv %s1889_s29 }
  0xad   :  { %v788_v20 = vadd.f32 %v786_v60, %v783_v14  ;;  %v789_v12 = vadd.f32 %v787_v61, %v784_v15  ;;  %v818_v52 = vstv %s1895_s30  ;;  %v814_v26 = vmul.f32 %v813_v24, %v1807_v50 }
  0xae   :  { %v806_v56 = vadd.f32 %v804_v16, %v801_v18  ;;  %v807_v25 = vadd.f32 %v805_v17, %v802_v19  ;;  %v815_v3 = vmul.f32 %v813_v24, %v1809_v51  ;;  %v819_v37 = vmul.f32 %v818_v52, %v1859_v6 }
  0xaf   :  { %v791_v4 = vadd.f32 %v790_v38, %v788_v20  ;;  %v792_v36 = vadd.f32 %v790_v38, %v789_v12  ;;  %v820_v27 = vmul.f32 %v818_v52, %v1861_v8  ;;  %v823_v23 = vstv %s1901_s8 }
  0xb0   :  { %v811_v22 = vadd.f32 %v809_v2, %v806_v56  ;;  %v812_v30 = vadd.f32 %v810_v7, %v807_v25  ;;  %v828_v31 = vstv %s1907_s9  ;;  %v824_v35 = vmul.f32 %v823_v23, %v1903_v55 }
  0xb1   :  { %v1949_v32 = vmax.f32 %v791_v4, 0.0  ;;  %v1951_v34 = vmax.f32 %v792_v36, 0.0  ;;  %v825_v38 = vmul.f32 %v823_v23, %v1905_v58  ;;  %v833_v63 = vstv %s1917_s11 }
  0xb2   :  { %v816_v39 = vadd.f32 %v814_v26, %v811_v22  ;;  %v817_v62 = vadd.f32 %v815_v3, %v812_v30  ;;  %v838_v28 = vstv %s1913_s10  ;;  %v841_v60 = vstv %s1923_s12 }
  0xb3   :  { %v829_v29 = vmul.f32 %v828_v31, %v1949_v32  ;;  %v830_v40 = vmul.f32 %v828_v31, %v1951_v34  ;;  %v839_v33 = vmul.f32 %v838_v28, %v1619_v53  ;;  %v840_v43 = vmul.f32 %v838_v28, %v1621_v54 }
  0xb4   :  { %v821_v59 = vadd.f32 %v819_v37, %v816_v39  ;;  %v822_v5 = vadd.f32 %v820_v27, %v817_v62  ;;  %v846_v61 = vstv %s1927_s13  ;;  %v842_v57 = vmul.f32 %v841_v60, %v1671_v46 }
  0xb5   :  { %v843_v13 = vmul.f32 %v841_v60, %v1673_v47  ;;  %v847_v21 = vmul.f32 %v846_v61, %v1717_v44  ;;  %v848_v9 = vmul.f32 %v846_v61, %v1719_v45  ;;  %v851_v1 = vstv %s1931_s1 }
  0xb6   :  { %v826_v10 = vadd.f32 %v824_v35, %v821_v59  ;;  %v827_v0 = vadd.f32 %v825_v38, %v822_v5  ;;  %v856_v11 = vstv %s1935_s14  ;;  %v844_v48 = vadd.f32 %v842_v57, %v839_v33 }
  0xb7   :  { %v845_v49 = vadd.f32 %v843_v13, %v840_v43  ;;  %v852_v14 = vmul.f32 %v851_v1, %v1761_v41  ;;  %v853_v15 = vmul.f32 %v851_v1, %v1763_v42  ;;  %v857_v18 = vmul.f32 %v856_v11, %v1807_v50 }
  0xb8   :  { %v831_v16 = vadd.f32 %v829_v29, %v826_v10  ;;  %v832_v17 = vadd.f32 %v830_v40, %v827_v0  ;;  %v858_v19 = vmul.f32 %v856_v11, %v1809_v51  ;;  %v849_v2 = vadd.f32 %v847_v21, %v844_v48 }
  0xb9   :  { %v850_v7 = vadd.f32 %v848_v9, %v845_v49  ;;  %v861_v20 = vstv %s1939_s15  ;;  %v866_v12 = vstv %s1943_s3  ;;  %v871_v37 = vstv %s1947_s16 }
  0xba   :  { %v834_v24 = vadd.f32 %v833_v63, %v831_v16  ;;  %v835_v52 = vadd.f32 %v833_v63, %v832_v17  ;;  %v862_v56 = vmul.f32 %v861_v20, %v1859_v6  ;;  %v863_v25 = vmul.f32 %v861_v20, %v1861_v8 }
  0xbb   :  { %v854_v26 = vadd.f32 %v852_v14, %v849_v2  ;;  %v855_v3 = vadd.f32 %v853_v15, %v850_v7  ;;  %v867_v4 = vmul.f32 %v866_v12, %v1903_v55  ;;  %v868_v36 = vmul.f32 %v866_v12, %v1905_v58 }
  0xbc   :  { %836 = vst [vmem:[#allocation15] sm:$0xff] %v834_v24  ;;  %v876_v27 = vstv %s1965_s19  ;;  %v882_v22 = vstv %s1955_s17  ;;  %v885_v30 = vstv %s1959_s18  ;;  %v872_v35 = vmul.f32 %v871_v37, %v1949_v32 }
  0xbd   :  { %837 = vst [vmem:[#allocation15 + $0x8] sm:$0xff] %v835_v52  ;;  %v859_v23 = vadd.f32 %v857_v18, %v854_v26  ;;  %v860_v31 = vadd.f32 %v858_v19, %v855_v3  ;;  %v873_v38 = vmul.f32 %v871_v37, %v1951_v34  ;;  %v883_v39 = vmul.f32 %v882_v22, %v1619_v53 }
  0xbe   :  { %v884_v62 = vmul.f32 %v882_v22, %v1621_v54  ;;  %v886_v63 = vmul.f32 %v885_v30, %v1671_v46  ;;  %v887_v28 = vmul.f32 %v885_v30, %v1673_v47  ;;  %v890_v33 = vstv %s1973_s20 }
  0xbf   :  { %v864_v29 = vadd.f32 %v862_v56, %v859_v23  ;;  %v865_v40 = vadd.f32 %v863_v25, %v860_v31  ;;  %v895_v43 = vstv %s1977_s0  ;;  %v891_v60 = vmul.f32 %v890_v33, %v1717_v44 }
  0xc0   :  { %v888_v59 = vadd.f32 %v886_v63, %v883_v39  ;;  %v889_v5 = vadd.f32 %v887_v28, %v884_v62  ;;  %v892_v61 = vmul.f32 %v890_v33, %v1719_v45  ;;  %v896_v54 = vmul.f32 %v895_v43, %v1761_v41 }
  0xc1   :  { %v869_v57 = vadd.f32 %v867_v4, %v864_v29  ;;  %v870_v53 = vadd.f32 %v868_v36, %v865_v40  ;;  %v897_v46 = vmul.f32 %v895_v43, %v1763_v42  ;;  %v900_v21 = vstv %s1983_s21 }
  0xc2   :  { %v893_v13 = vadd.f32 %v891_v60, %v888_v59  ;;  %v894_v47 = vadd.f32 %v892_v61, %v889_v5  ;;  %v905_v9 = vstv %s1987_s2  ;;  %v901_v44 = vmul.f32 %v900_v21, %v1807_v50 }
  0xc3   :  { %v874_v10 = vadd.f32 %v872_v35, %v869_v57  ;;  %v875_v0 = vadd.f32 %v873_v38, %v870_v53  ;;  %v902_v45 = vmul.f32 %v900_v21, %v1809_v51  ;;  %v906_v41 = vmul.f32 %v905_v9, %v1859_v6 }
  0xc4   :  { %v898_v1 = vadd.f32 %v896_v54, %v893_v13  ;;  %v899_v11 = vadd.f32 %v897_v46, %v894_v47  ;;  %v907_v42 = vmul.f32 %v905_v9, %v1861_v8  ;;  %v910_v14 = vstv %s1993_s22 }
  0xc5   :  { %v877_v48 = vadd.f32 %v876_v27, %v874_v10  ;;  %v878_v49 = vadd.f32 %v876_v27, %v875_v0  ;;  %v915_v15 = vstv %s1999_s23  ;;  %v911_v18 = vmul.f32 %v910_v14, %v1903_v55 }
  0xc6   :  { %v903_v16 = vadd.f32 %v901_v44, %v898_v1  ;;  %v904_v17 = vadd.f32 %v902_v45, %v899_v11  ;;  %v912_v19 = vmul.f32 %v910_v14, %v1905_v58  ;;  %v916_v2 = vmul.f32 %v915_v15, %v1949_v32 }
  0xc7   :  { %880 = vst [vmem:[#allocation15 + $0x10] sm:$0xff] %v877_v48  ;;  %v917_v6 = vmul.f32 %v915_v15, %v1951_v34  ;;  %v920_v20 = vstv %s2015_s24 }
  0xc8   :  { %881 = vst [vmem:[#allocation15 + $0x18] sm:$0xff] %v878_v49  ;;  %v908_v50 = vadd.f32 %v906_v41, %v903_v16  ;;  %v909_v51 = vadd.f32 %v907_v42, %v904_v17 }
  0xca   :  { %v913_v8 = vadd.f32 %v911_v18, %v908_v50  ;;  %v914_v7 = vadd.f32 %v912_v19, %v909_v51 }
  0xcc   :  { %v918_v12 = vadd.f32 %v916_v2, %v913_v8  ;;  %v919_v24 = vadd.f32 %v917_v6, %v914_v7 }
  0xce   :  { %v921_v55 = vadd.f32 %v920_v20, %v918_v12  ;;  %v922_v58 = vadd.f32 %v920_v20, %v919_v24 }
  0xd0   :  { %924 = vst [vmem:[#allocation15 + $0x20] sm:$0xff] %v921_v55 }
  0xd1   :  { %925 = vst [vmem:[#allocation15 + $0x28] sm:$0xff] %v922_v58 }
  0xd2   :  { %938 = dma.vmem_to_hbm [thread:$0]  %s931_s5, 768, %s933_s28, [#allocation4], %s1236_s26, %s1236_s26, %s1237_s4  }
  0xd3   :  { %1227 = dma.done.wait [#allocation4], 768  }
  0xd4   :  { %1228 = vsyncadd [#allocation4], 4294966528 }
  0xd5   :  { %943 = vsyncpa [#allocation3], 1 }
  0xd6   :  { %944 = vsyncpa [#allocation4], 1 }
  0xd7   :  { %945 = vsyncpa [#allocation5], 1 }
  0xd8   :  { %946 = vsyncpa [#allocation7], 1 }
  0xd9   :  { %947 = vsyncpa [#allocation10], 1 }
  0xda   :  { %948 = vsyncpa [#allocation13], 1 }

</bundles_post_ra>
